<compile_context>
chip_gen: v5e
topology: v5e:2x2
jax: 0.10.0
libtpu: 0.0.40
codegen_flags: <defaults>
</compile_context>

<pallas_src>
import math

import jax
import jax.numpy as jnp
from jax import lax
from jax.experimental import pallas as pl
from jax.experimental.pallas import tpu as pltpu


# ----------------------------------------------------------------------------
# In-kernel helpers (traced into the Pallas body).
# ----------------------------------------------------------------------------
def _layer_norm(x, gamma, beta, eps=1e-6):
    mu = jnp.mean(x, axis=-1, keepdims=True)
    xc = x - mu
    var = jnp.mean(xc * xc, axis=-1, keepdims=True)
    return xc * lax.rsqrt(var + eps) * gamma + beta


def _mha(q_heads, k_heads, v_heads, wo_bf16, mask):
    """Multi-head attention.

    q_heads/k_heads/v_heads are lists of per-head (Lq|Lkv, hd) f32 tensors (the
    1/sqrt(hd) scale is folded into the Q weights). Scores/softmax are computed per
    head; the head outputs are concatenated on the lane axis and projected with ONE
    full-K (Lq,H)@(H,H) bf16 matmul (instead of NH underfilled K=hd matmuls).
    """
    heads_out = []
    # NOTE: static unroll is fine at num_heads=4; for NH >= 16 switch to
    # lax.fori_loop over pl.ds(h*hd, hd) slices to keep live ranges bounded.
    for qh, kh, vh in zip(q_heads, k_heads, v_heads):
        s = lax.dot_general(qh.astype(jnp.bfloat16), kh.astype(jnp.bfloat16),
                            (((1,), (1,)), ((), ())),
                            preferred_element_type=jnp.float32)          # (Lq, Lkv)
        if mask is not None:
            s = s + mask
        m = jnp.max(s, axis=-1, keepdims=True)
        p = jnp.exp(s - m)
        denom = jnp.sum(p, axis=-1, keepdims=True)
        p = p * pl.reciprocal(denom, approx=True)                        # EUP reciprocal
        heads_out.append(jnp.dot(p.astype(jnp.bfloat16), vh.astype(jnp.bfloat16),
                                 preferred_element_type=jnp.float32))    # (Lq, hd)
    attn = jnp.concatenate(heads_out, axis=-1)                           # (Lq, H)
    return jnp.dot(attn.astype(jnp.bfloat16), wo_bf16,
                   preferred_element_type=jnp.float32)                   # (Lq, H)


def _make_layer_kernel(num_heads, head_dim, hidden, inter,
                       self_mask_kind, cross_mask_kind):
    """mask_kind in {None, "shared", "batched"}."""
    H, I, hd = hidden, inter, head_dim

    def kernel(*refs):
        (z_ref, enc_ref, cos_ref, sin_ref, ln_ref,
         w_sa_ref, wo_sa_ref, w_caq_ref, w_ckv_ref, wo_ca_ref,
         w_gu_ref, w_dn_ref) = refs[:12]
        idx = 12

        def read_mask(kind):
            nonlocal idx
            if kind is None:
                return None
            r = refs[idx]
            idx += 1
            return r[0] if kind == "batched" else r[...]

        self_mask = read_mask(self_mask_kind)
        cross_mask = read_mask(cross_mask_kind)
        out_ref = refs[idx]

        z = z_ref[0].astype(jnp.float32)          # (L,   H)  residual stream, f32
        cos = cos_ref[0]                          # (L,   hd) shared across heads
        sin = sin_ref[0]                          # (L,   hd)
        ln = ln_ref[...]                          # (6,   H)  [g1 b1 g2 b2 g3 b3]

        def split_heads_rope(base, base_rot):
            # base/base_rot: (L*, H) f32. RoPE applied per head slice with the shared
            # (L, hd) cos/sin tables (no head-tiled tables are ever materialized).
            return [base[:, h * hd:(h + 1) * hd] * cos
                    + base_rot[:, h * hd:(h + 1) * hd] * sin
                    for h in range(num_heads)]

        def split_heads(base):
            return [base[:, h * hd:(h + 1) * hd] for h in range(num_heads)]

        # ---------------- self attention ----------------
        zn = _layer_norm(z, ln[0:1, :], ln[1:2, :])
        proj = jnp.dot(zn.astype(jnp.bfloat16), w_sa_ref[...],
                       preferred_element_type=jnp.float32)               # (L, 5H)
        q = split_heads_rope(proj[:, 0:H], proj[:, H:2 * H])             # RoPE folded
        k = split_heads_rope(proj[:, 2 * H:3 * H], proj[:, 3 * H:4 * H])
        v = split_heads(proj[:, 4 * H:5 * H])
        z = z + _mha(q, k, v, wo_sa_ref[...], self_mask)

        # ---------------- cross attention (RoPE on Q only) ----------------
        zn = _layer_norm(z, ln[2:3, :], ln[3:4, :])
        qproj = jnp.dot(zn.astype(jnp.bfloat16), w_caq_ref[...],
                        preferred_element_type=jnp.float32)              # (L, 2H)
        kvproj = jnp.dot(enc_ref[0].astype(jnp.bfloat16), w_ckv_ref[...],
                         preferred_element_type=jnp.float32)             # (Lkv, 2H)
        q = split_heads_rope(qproj[:, 0:H], qproj[:, H:2 * H])
        k = split_heads(kvproj[:, 0:H])
        v = split_heads(kvproj[:, H:2 * H])
        z = z + _mha(q, k, v, wo_ca_ref[...], cross_mask)

        # ---------------- MLP (LlamaMLP: down(silu(gate) * up)) ----------------
        zn = _layer_norm(z, ln[4:5, :], ln[5:6, :])
        gu = jnp.dot(zn.astype(jnp.bfloat16), w_gu_ref[...],
                     preferred_element_type=jnp.float32)                 # (L, 2I)
        gate = gu[:, 0:I]
        up = gu[:, I:2 * I]
        # SiLU with a single EUP transcendental: sigmoid(x) = 0.5*(1 + tanh(x/2)).
        act = gate * (0.5 * (1.0 + jnp.tanh(0.5 * gate)))
        z = z + jnp.dot((act * up).astype(jnp.bfloat16), w_dn_ref[...],
                        preferred_element_type=jnp.float32)

        out_ref[0] = z.astype(out_ref.dtype)

    return kernel


# ----------------------------------------------------------------------------
# Wrapper: trace-time weight pre-transformation + pallas_call.
# ----------------------------------------------------------------------------
def span_encoder_layer(latent_z, h_dec_k_positions, global_position_ids_k, params,
                       *, num_heads, rope_theta=10000.0,
                       self_attn_mask=None, cross_attn_mask=None):
    B, L, H = latent_z.shape
    _, Lkv, _ = h_dec_k_positions.shape
    assert H % num_heads == 0
    hd = H // num_heads
    scale = 1.0 / math.sqrt(hd)
    bf16, f32 = jnp.bfloat16, jnp.float32

    # RoPE cos/sin tables at (B, L, head_dim) only (no head tiling — done per head slice
    # in-kernel), built once in plain JAX.
    inv_freq = 1.0 / (rope_theta ** (jnp.arange(0, hd, 2, dtype=f32) / hd))
    freqs = global_position_ids_k.astype(f32)[..., None] * inv_freq[None, None, :]
    emb = jnp.concatenate([freqs, freqs], axis=-1)            # (B, L, hd)
    cos = jnp.cos(emb)
    sin = jnp.sin(emb)

    def fold_rotate_half(w):
        # Columns permuted + signed per head so that x @ fold(w) == rotate_half(x @ w).
        half = hd // 2
        cols = []
        for h in range(num_heads):
            lo = h * hd
            cols.append(-w[:, lo + half:lo + hd])
            cols.append(w[:, lo:lo + half])
        return jnp.concatenate(cols, axis=1)

    # Fused, pre-transformed weights (1/sqrt(hd) + rotate_half folded), stored bf16 for
    # the native MXU path + half the weight DMA / VMEM. Accumulation stays f32.
    w_sa = jnp.concatenate([params["wq_s"] * scale, fold_rotate_half(params["wq_s"]) * scale,
                            params["wk_s"], fold_rotate_half(params["wk_s"]),
                            params["wv_s"]], axis=1).astype(bf16)               # (H, 5H)
    w_caq = jnp.concatenate([params["wq_c"] * scale,
                             fold_rotate_half(params["wq_c"]) * scale], axis=1).astype(bf16)
    w_ckv = jnp.concatenate([params["wk_c"], params["wv_c"]], axis=1).astype(bf16)
    w_gu = jnp.concatenate([params["w_gate"], params["w_up"]], axis=1).astype(bf16)
    w_dn = params["w_down"].astype(bf16)                                         # (I, H)
    wo_s = params["wo_s"].astype(bf16)
    wo_c = params["wo_c"].astype(bf16)
    I = params["w_down"].shape[0]
    ln = jnp.stack([params["ln1_g"], params["ln1_b"],
                    params["ln2_g"], params["ln2_b"],
                    params["ln3_g"], params["ln3_b"]], axis=0).astype(f32)       # (6, H)

    # Encoder states only feed the MXU -> ship as bf16 (halves their HBM/VMEM traffic).
    enc = h_dec_k_positions.astype(bf16)

    def batch_spec(shape):
        nd = len(shape)
        return pl.BlockSpec(shape, lambda b: (b,) + (0,) * (nd - 1))

    def const_spec(shape):
        nd = len(shape)
        # Block index never changes across the grid -> single-buffer (double-buffering
        # invariant weights only doubles VMEM; matters for v7x's 64 MiB / v5e's limit).
        return pl.BlockSpec(shape, lambda b: (0,) * nd, pipeline_mode=pl.Buffered(1))

    def prep_mask(mask, Lq, Lk):
        if mask is None:
            return None, None, None
        m = jnp.asarray(mask)
        if m.dtype == jnp.bool_:                  # SDPA bool semantics: True = attend
            m = jnp.where(m, 0.0, -1e9)
        m = m.astype(f32)
        if m.ndim == 4:                           # torch-style (B|1, 1, Lq, Lk)
            m = m[:, 0]
        if m.ndim == 3 and m.shape[0] == 1:
            m = m[0]
        if m.ndim == 2:                           # batch-invariant: one copy, Buffered(1)
            return jnp.broadcast_to(m, (Lq, Lk)), const_spec((Lq, Lk)), "shared"
        return (jnp.broadcast_to(m, (B, Lq, Lk)), batch_spec((1, Lq, Lk)), "batched")

    in_specs = [
        batch_spec((1, L, H)),        # latent_z (f32 residual stream)
        batch_spec((1, Lkv, H)),      # encoder hidden states (bf16)
        batch_spec((1, L, hd)),       # cos (per-head-dim only)
        batch_spec((1, L, hd)),       # sin
        const_spec((6, H)),           # packed LayerNorm params
        const_spec((H, 5 * H)),       # self-attn fused [Q|Qrot|K|Krot|V]
        const_spec((H, H)),           # self-attn Wo
        const_spec((H, 2 * H)),       # cross-attn fused [Q|Qrot]
        const_spec((H, 2 * H)),       # cross-attn fused [K|V]
        const_spec((H, H)),           # cross-attn Wo
        const_spec((H, 2 * I)),       # MLP [gate|up]
        const_spec((I, H)),           # MLP down
    ]
    args = [latent_z, enc, cos, sin, ln, w_sa, wo_s, w_caq, w_ckv, wo_c, w_gu, w_dn]
    nbuf = [2, 2, 2, 2, 1, 1, 1, 1, 1, 1, 1, 1]
    per_batch = [True, True, True, True] + [False] * 8

    sm, sm_spec, sm_kind = prep_mask(self_attn_mask, L, L)
    if sm is not None:
        args.append(sm); in_specs.append(sm_spec)
        nbuf.append(1 if sm_kind == "shared" else 2)
        per_batch.append(sm_kind == "batched")
    cm, cm_spec, cm_kind = prep_mask(cross_attn_mask, L, Lkv)
    if cm is not None:
        args.append(cm); in_specs.append(cm_spec)
        nbuf.append(1 if cm_kind == "shared" else 2)
        per_batch.append(cm_kind == "batched")

    # Explicit VMEM budget from the actual block sizes (defaults: 16 MiB v5e / 32 MiB
    # v6e+ scoped limit would bite long before physical VMEM at production H/I).
    block_vmem = sum((a.size // (B if pb else 1)) * a.dtype.itemsize * n
                     for a, pb, n in zip(args, per_batch, nbuf))
    block_vmem += L * H * latent_z.dtype.itemsize * 2                    # output block
    vmem_limit = int(min(64 * 2**20, max(32 * 2**20, 2 * block_vmem + (8 << 20))))

    kernel = _make_layer_kernel(num_heads, hd, H, I, sm_kind, cm_kind)

    grid_spec = pltpu.PrefetchScalarGridSpec(
        num_scalar_prefetch=0,
        grid=(B,),
        in_specs=in_specs,
        out_specs=batch_spec((1, L, H)),
    )

    return pl.pallas_call(
        kernel,
        out_shape=jax.ShapeDtypeStruct((B, L, H), latent_z.dtype),
        grid_spec=grid_spec,
        compiler_params=pltpu.CompilerParams(
            dimension_semantics=("parallel",),
            vmem_limit_bytes=vmem_limit),
    )(*args)


# ----------------------------------------------------------------------------
# Pure-JAX f32 reference mirroring the PyTorch SpanEncoderLayer forward.
# ----------------------------------------------------------------------------
def _reference(latent_z, enc, pos_ids, params, *, num_heads, rope_theta=10000.0):
    B, L, H = latent_z.shape
    _, Lkv, _ = enc.shape
    hd = H // num_heads

    def layer_norm(x, g, b, eps=1e-6):
        mu = x.mean(-1, keepdims=True)
        var = ((x - mu) ** 2).mean(-1, keepdims=True)
        return (x - mu) / jnp.sqrt(var + eps) * g + b

    def shape_heads(t, Lx):
        return t.reshape(B, Lx, num_heads, hd).transpose(0, 2, 1, 3)

    inv_freq = 1.0 / (rope_theta ** (jnp.arange(0, hd, 2, dtype=jnp.float32) / hd))
    freqs = pos_ids.astype(jnp.float32)[..., None] * inv_freq[None, None, :]
    emb = jnp.concatenate([freqs, freqs], axis=-1)
    cos = jnp.cos(emb)[:, None]
    sin = jnp.sin(emb)[:, None]

    def rotate_half(x):
        return jnp.concatenate([-x[..., hd // 2:], x[..., :hd // 2]], axis=-1)

    def attend(q, k, v, wo):
        s = jnp.einsum("bhqd,bhkd->bhqk", q, k) / math.sqrt(hd)
        p = jax.nn.softmax(s, axis=-1)
        o = jnp.einsum("bhqk,bhkd->bhqd", p, v)
        o = o.transpose(0, 2, 1, 3).reshape(B, -1, H)
        return o @ wo

    zn = layer_norm(latent_z, params["ln1_g"], params["ln1_b"])
    q = shape_heads(zn @ params["wq_s"], L)
    k = shape_heads(zn @ params["wk_s"], L)
    v = shape_heads(zn @ params["wv_s"], L)
    q = q * cos + rotate_half(q) * sin
    k = k * cos + rotate_half(k) * sin
    z = latent_z + attend(q, k, v, params["wo_s"])

    zn = layer_norm(z, params["ln2_g"], params["ln2_b"])
    q = shape_heads(zn @ params["wq_c"], L)
    k = shape_heads(enc @ params["wk_c"], Lkv)
    v = shape_heads(enc @ params["wv_c"], Lkv)
    q = q * cos + rotate_half(q) * sin
    z = z + attend(q, k, v, params["wo_c"])

    zn = layer_norm(z, params["ln3_g"], params["ln3_b"])
    gate = zn @ params["w_gate"]
    up = zn @ params["w_up"]
    z = z + (jax.nn.silu(gate) * up) @ params["w_down"]
    return z


def _xavier_uniform(key, fan_in, fan_out):
    bound = math.sqrt(6.0 / (fan_in + fan_out))
    return jax.random.uniform(key, (fan_in, fan_out), jnp.float32, -bound, bound)


if __name__ == "__main__":
    # Config: hidden_size=32, num_attention_heads=4 -> head_dim=8, intermediate_size=64
    B, L, Lkv, H, NH, I = 2, 8, 16, 32, 4, 64
    rope_theta = 10000.0

    key = jax.random.PRNGKey(0)
    ks = jax.random.split(key, 19)

    latent_z = jax.random.normal(ks[0], (B, L, H), jnp.float32)
    h_dec_k_positions = jax.random.normal(ks[1], (B, Lkv, H), jnp.float32)
    global_position_ids_k = jnp.broadcast_to(jnp.arange(L, dtype=jnp.int32)[None, :], (B, L))

    params = dict(
        # self-attention projections (stored (in, out))
        wq_s=_xavier_uniform(ks[2], H, H), wk_s=_xavier_uniform(ks[3], H, H),
        wv_s=_xavier_uniform(ks[4], H, H), wo_s=_xavier_uniform(ks[5], H, H),
        # cross-attention projections
        wq_c=_xavier_uniform(ks[6], H, H), wk_c=_xavier_uniform(ks[7], H, H),
        wv_c=_xavier_uniform(ks[8], H, H), wo_c=_xavier_uniform(ks[9], H, H),
        # LlamaMLP
        w_gate=_xavier_uniform(ks[10], H, I), w_up=_xavier_uniform(ks[11], H, I),
        w_down=_xavier_uniform(ks[12], I, H),
        # LayerNorm affine params (perturbed from 1/0 defaults to exercise the math)
        ln1_g=1.0 + 0.05 * jax.random.normal(ks[13], (H,), jnp.float32),
        ln1_b=0.05 * jax.random.normal(ks[14], (H,), jnp.float32),
        ln2_g=1.0 + 0.05 * jax.random.normal(ks[15], (H,), jnp.float32),
        ln2_b=0.05 * jax.random.normal(ks[16], (H,), jnp.float32),
        ln3_g=1.0 + 0.05 * jax.random.normal(ks[17], (H,), jnp.float32),
        ln3_b=0.05 * jax.random.normal(ks[18], (H,), jnp.float32),
    )

    out = span_encoder_layer(latent_z, h_dec_k_positions, global_position_ids_k, params,
                             num_heads=NH, rope_theta=rope_theta,
                             self_attn_mask=None, cross_attn_mask=None)
    out = jax.block_until_ready(out)

    ref = _reference(latent_z, h_dec_k_positions, global_position_ids_k, params,
                     num_heads=NH, rope_theta=rope_theta)

    assert out.shape == (B, L, H)
    err = float(jnp.max(jnp.abs(out - ref)))
    # Tolerance covers bf16 MXU operands + approximate EUP reciprocal in the softmax.
    assert jnp.allclose(out, ref, rtol=2e-2, atol=2e-2), f"mismatch vs reference, max |err|={err}"

    print("KERNEL_OK")
</pallas_src>

<mosaic_0001>
module attributes {stable_mosaic.version = 11 : i64} {
  func.func @kernel(%arg0: i32, %arg1: memref<1x8x32xf32, #tpu.memory_space<vmem>>, %arg2: memref<1x16x32xbf16, #tpu.memory_space<vmem>>, %arg3: memref<1x8x8xf32, #tpu.memory_space<vmem>>, %arg4: memref<1x8x8xf32, #tpu.memory_space<vmem>>, %arg5: memref<6x32xf32, #tpu.memory_space<vmem>>, %arg6: memref<32x160xbf16, #tpu.memory_space<vmem>>, %arg7: memref<32x32xbf16, #tpu.memory_space<vmem>>, %arg8: memref<32x64xbf16, #tpu.memory_space<vmem>>, %arg9: memref<32x64xbf16, #tpu.memory_space<vmem>>, %arg10: memref<32x32xbf16, #tpu.memory_space<vmem>>, %arg11: memref<32x128xbf16, #tpu.memory_space<vmem>>, %arg12: memref<64x32xbf16, #tpu.memory_space<vmem>>, %arg13: memref<1x8x32xf32, #tpu.memory_space<vmem>>) attributes {dimension_semantics = [#tpu.dimension_semantics<parallel>], iteration_bounds = array<i64: 2>, scalar_prefetch = 0 : i64, scratch_operands = 0 : i64, tpu.core_type = #tpu.core_type<tc>, window_params = [{transform_indices = @transform_0, window_bounds = array<i64: 1, 8, 32>}, {transform_indices = @transform_1, window_bounds = array<i64: 1, 16, 32>}, {transform_indices = @transform_2, window_bounds = array<i64: 1, 8, 8>}, {transform_indices = @transform_3, window_bounds = array<i64: 1, 8, 8>}, {pipeline_mode = #tpu.pipeline_mode<synchronous>, transform_indices = @transform_4, window_bounds = array<i64: 6, 32>}, {pipeline_mode = #tpu.pipeline_mode<synchronous>, transform_indices = @transform_5, window_bounds = array<i64: 32, 160>}, {pipeline_mode = #tpu.pipeline_mode<synchronous>, transform_indices = @transform_6, window_bounds = array<i64: 32, 32>}, {pipeline_mode = #tpu.pipeline_mode<synchronous>, transform_indices = @transform_7, window_bounds = array<i64: 32, 64>}, {pipeline_mode = #tpu.pipeline_mode<synchronous>, transform_indices = @transform_8, window_bounds = array<i64: 32, 64>}, {pipeline_mode = #tpu.pipeline_mode<synchronous>, transform_indices = @transform_9, window_bounds = array<i64: 32, 32>}, {pipeline_mode = #tpu.pipeline_mode<synchronous>, transform_indices = @transform_10, window_bounds = array<i64: 32, 128>}, {pipeline_mode = #tpu.pipeline_mode<synchronous>, transform_indices = @transform_11, window_bounds = array<i64: 64, 32>}, {transform_indices = @transform_12, window_bounds = array<i64: 1, 8, 32>}]} {
    %c0 = arith.constant 0 : index
    %c0_0 = arith.constant 0 : index
    %c0_1 = arith.constant 0 : index
    %0 = vector.load %arg1[%c0, %c0_0, %c0_1] : memref<1x8x32xf32, #tpu.memory_space<vmem>>, vector<1x8x32xf32>
    %1 = vector.shape_cast %0 : vector<1x8x32xf32> to vector<8x32xf32>
    %c0_2 = arith.constant 0 : index
    %c0_3 = arith.constant 0 : index
    %c0_4 = arith.constant 0 : index
    %2 = vector.load %arg3[%c0_2, %c0_3, %c0_4] : memref<1x8x8xf32, #tpu.memory_space<vmem>>, vector<1x8x8xf32>
    %3 = vector.shape_cast %2 : vector<1x8x8xf32> to vector<8x8xf32>
    %c0_5 = arith.constant 0 : index
    %c0_6 = arith.constant 0 : index
    %c0_7 = arith.constant 0 : index
    %4 = vector.load %arg4[%c0_5, %c0_6, %c0_7] : memref<1x8x8xf32, #tpu.memory_space<vmem>>, vector<1x8x8xf32>
    %5 = vector.shape_cast %4 : vector<1x8x8xf32> to vector<8x8xf32>
    %c0_8 = arith.constant 0 : index
    %c0_9 = arith.constant 0 : index
    %6 = vector.load %arg5[%c0_8, %c0_9] : memref<6x32xf32, #tpu.memory_space<vmem>>, vector<6x32xf32>
    %7 = vector.extract_strided_slice %6 {offsets = [0, 0], sizes = [1, 32], strides = [1, 1]} : vector<6x32xf32> to vector<1x32xf32>
    %8 = vector.extract_strided_slice %6 {offsets = [1, 0], sizes = [1, 32], strides = [1, 1]} : vector<6x32xf32> to vector<1x32xf32>
    %cst = arith.constant dense<0.000000e+00> : vector<8xf32>
    %9 = vector.multi_reduction <add>, %1, %cst [1] : vector<8x32xf32> to vector<8xf32>
    %10 = vector.shape_cast %9 : vector<8xf32> to vector<8x1xf32>
    %cst_10 = arith.constant 3.200000e+01 : f32
    %11 = vector.broadcast %cst_10 : f32 to vector<8x1xf32>
    %12 = arith.divf %10, %11 : vector<8x1xf32>
    %13 = vector.broadcast %12 : vector<8x1xf32> to vector<8x32xf32>
    %14 = arith.subf %1, %13 : vector<8x32xf32>
    %15 = arith.mulf %14, %14 : vector<8x32xf32>
    %cst_11 = arith.constant dense<0.000000e+00> : vector<8xf32>
    %16 = vector.multi_reduction <add>, %15, %cst_11 [1] : vector<8x32xf32> to vector<8xf32>
    %17 = vector.shape_cast %16 : vector<8xf32> to vector<8x1xf32>
    %cst_12 = arith.constant 3.200000e+01 : f32
    %18 = vector.broadcast %cst_12 : f32 to vector<8x1xf32>
    %19 = arith.divf %17, %18 : vector<8x1xf32>
    %cst_13 = arith.constant 9.99999997E-7 : f32
    %20 = vector.broadcast %cst_13 : f32 to vector<8x1xf32>
    %21 = arith.addf %19, %20 : vector<8x1xf32>
    %22 = math.rsqrt %21 : vector<8x1xf32>
    %23 = vector.broadcast %22 : vector<8x1xf32> to vector<8x32xf32>
    %24 = arith.mulf %14, %23 : vector<8x32xf32>
    %25 = vector.broadcast %7 : vector<1x32xf32> to vector<8x32xf32>
    %26 = arith.mulf %24, %25 : vector<8x32xf32>
    %27 = vector.broadcast %8 : vector<1x32xf32> to vector<8x32xf32>
    %28 = arith.addf %26, %27 : vector<8x32xf32>
    %29 = arith.truncf %28 : vector<8x32xf32> to vector<8x32xbf16>
    %c0_14 = arith.constant 0 : index
    %c0_15 = arith.constant 0 : index
    %30 = vector.load %arg6[%c0_14, %c0_15] : memref<32x160xbf16, #tpu.memory_space<vmem>>, vector<32x160xbf16>
    %cst_16 = arith.constant dense<0.000000e+00> : vector<8x160xf32>
    %31 = tpu.matmul %29, %30, %cst_16 {dimension_numbers = #tpu.dot_dimension_numbers<[1], [0], [0], [1], [0, 0, 1, 1], [], []>} : vector<8x32xbf16>, vector<32x160xbf16>, vector<8x160xf32> -> vector<8x160xf32>
    %32 = vector.extract_strided_slice %31 {offsets = [0, 0], sizes = [8, 32], strides = [1, 1]} : vector<8x160xf32> to vector<8x32xf32>
    %33 = vector.extract_strided_slice %31 {offsets = [0, 32], sizes = [8, 32], strides = [1, 1]} : vector<8x160xf32> to vector<8x32xf32>
    %34 = vector.extract_strided_slice %32 {offsets = [0, 0], sizes = [8, 8], strides = [1, 1]} : vector<8x32xf32> to vector<8x8xf32>
    %35 = arith.mulf %34, %3 : vector<8x8xf32>
    %36 = vector.extract_strided_slice %33 {offsets = [0, 0], sizes = [8, 8], strides = [1, 1]} : vector<8x32xf32> to vector<8x8xf32>
    %37 = arith.mulf %36, %5 : vector<8x8xf32>
    %38 = arith.addf %35, %37 : vector<8x8xf32>
    %39 = vector.extract_strided_slice %32 {offsets = [0, 8], sizes = [8, 8], strides = [1, 1]} : vector<8x32xf32> to vector<8x8xf32>
    %40 = arith.mulf %39, %3 : vector<8x8xf32>
    %41 = vector.extract_strided_slice %33 {offsets = [0, 8], sizes = [8, 8], strides = [1, 1]} : vector<8x32xf32> to vector<8x8xf32>
    %42 = arith.mulf %41, %5 : vector<8x8xf32>
    %43 = arith.addf %40, %42 : vector<8x8xf32>
    %44 = vector.extract_strided_slice %32 {offsets = [0, 16], sizes = [8, 8], strides = [1, 1]} : vector<8x32xf32> to vector<8x8xf32>
    %45 = arith.mulf %44, %3 : vector<8x8xf32>
    %46 = vector.extract_strided_slice %33 {offsets = [0, 16], sizes = [8, 8], strides = [1, 1]} : vector<8x32xf32> to vector<8x8xf32>
    %47 = arith.mulf %46, %5 : vector<8x8xf32>
    %48 = arith.addf %45, %47 : vector<8x8xf32>
    %49 = vector.extract_strided_slice %32 {offsets = [0, 24], sizes = [8, 8], strides = [1, 1]} : vector<8x32xf32> to vector<8x8xf32>
    %50 = arith.mulf %49, %3 : vector<8x8xf32>
    %51 = vector.extract_strided_slice %33 {offsets = [0, 24], sizes = [8, 8], strides = [1, 1]} : vector<8x32xf32> to vector<8x8xf32>
    %52 = arith.mulf %51, %5 : vector<8x8xf32>
    %53 = arith.addf %50, %52 : vector<8x8xf32>
    %54 = vector.extract_strided_slice %31 {offsets = [0, 64], sizes = [8, 32], strides = [1, 1]} : vector<8x160xf32> to vector<8x32xf32>
    %55 = vector.extract_strided_slice %31 {offsets = [0, 96], sizes = [8, 32], strides = [1, 1]} : vector<8x160xf32> to vector<8x32xf32>
    %56 = vector.extract_strided_slice %54 {offsets = [0, 0], sizes = [8, 8], strides = [1, 1]} : vector<8x32xf32> to vector<8x8xf32>
    %57 = arith.mulf %56, %3 : vector<8x8xf32>
    %58 = vector.extract_strided_slice %55 {offsets = [0, 0], sizes = [8, 8], strides = [1, 1]} : vector<8x32xf32> to vector<8x8xf32>
    %59 = arith.mulf %58, %5 : vector<8x8xf32>
    %60 = arith.addf %57, %59 : vector<8x8xf32>
    %61 = vector.extract_strided_slice %54 {offsets = [0, 8], sizes = [8, 8], strides = [1, 1]} : vector<8x32xf32> to vector<8x8xf32>
    %62 = arith.mulf %61, %3 : vector<8x8xf32>
    %63 = vector.extract_strided_slice %55 {offsets = [0, 8], sizes = [8, 8], strides = [1, 1]} : vector<8x32xf32> to vector<8x8xf32>
    %64 = arith.mulf %63, %5 : vector<8x8xf32>
    %65 = arith.addf %62, %64 : vector<8x8xf32>
    %66 = vector.extract_strided_slice %54 {offsets = [0, 16], sizes = [8, 8], strides = [1, 1]} : vector<8x32xf32> to vector<8x8xf32>
    %67 = arith.mulf %66, %3 : vector<8x8xf32>
    %68 = vector.extract_strided_slice %55 {offsets = [0, 16], sizes = [8, 8], strides = [1, 1]} : vector<8x32xf32> to vector<8x8xf32>
    %69 = arith.mulf %68, %5 : vector<8x8xf32>
    %70 = arith.addf %67, %69 : vector<8x8xf32>
    %71 = vector.extract_strided_slice %54 {offsets = [0, 24], sizes = [8, 8], strides = [1, 1]} : vector<8x32xf32> to vector<8x8xf32>
    %72 = arith.mulf %71, %3 : vector<8x8xf32>
    %73 = vector.extract_strided_slice %55 {offsets = [0, 24], sizes = [8, 8], strides = [1, 1]} : vector<8x32xf32> to vector<8x8xf32>
    %74 = arith.mulf %73, %5 : vector<8x8xf32>
    %75 = arith.addf %72, %74 : vector<8x8xf32>
    %76 = vector.extract_strided_slice %31 {offsets = [0, 128], sizes = [8, 32], strides = [1, 1]} : vector<8x160xf32> to vector<8x32xf32>
    %77 = vector.extract_strided_slice %76 {offsets = [0, 0], sizes = [8, 8], strides = [1, 1]} : vector<8x32xf32> to vector<8x8xf32>
    %78 = vector.extract_strided_slice %76 {offsets = [0, 8], sizes = [8, 8], strides = [1, 1]} : vector<8x32xf32> to vector<8x8xf32>
    %79 = vector.extract_strided_slice %76 {offsets = [0, 16], sizes = [8, 8], strides = [1, 1]} : vector<8x32xf32> to vector<8x8xf32>
    %80 = vector.extract_strided_slice %76 {offsets = [0, 24], sizes = [8, 8], strides = [1, 1]} : vector<8x32xf32> to vector<8x8xf32>
    %c0_17 = arith.constant 0 : index
    %c0_18 = arith.constant 0 : index
    %81 = vector.load %arg7[%c0_17, %c0_18] : memref<32x32xbf16, #tpu.memory_space<vmem>>, vector<32x32xbf16>
    %82 = arith.truncf %38 : vector<8x8xf32> to vector<8x8xbf16>
    %83 = arith.truncf %60 : vector<8x8xf32> to vector<8x8xbf16>
    %cst_19 = arith.constant dense<0.000000e+00> : vector<8x8xf32>
    %84 = tpu.matmul %82, %83, %cst_19 {dimension_numbers = #tpu.dot_dimension_numbers<[1], [1], [0], [0], [0, 0, 1, 0], [], []>} : vector<8x8xbf16>, vector<8x8xbf16>, vector<8x8xf32> -> vector<8x8xf32>
    %cst_20 = arith.constant dense<0xFF800000> : vector<8xf32>
    %85 = vector.multi_reduction <maximumf>, %84, %cst_20 [1] : vector<8x8xf32> to vector<8xf32>
    %86 = vector.shape_cast %85 : vector<8xf32> to vector<8x1xf32>
    %87 = vector.broadcast %86 : vector<8x1xf32> to vector<8x8xf32>
    %88 = arith.subf %84, %87 : vector<8x8xf32>
    %89 = math.exp %88 : vector<8x8xf32>
    %cst_21 = arith.constant dense<0.000000e+00> : vector<8xf32>
    %90 = vector.multi_reduction <add>, %89, %cst_21 [1] : vector<8x8xf32> to vector<8xf32>
    %91 = vector.shape_cast %90 : vector<8xf32> to vector<8x1xf32>
    %92 = tpu.reciprocal %91 {approx = true} : vector<8x1xf32> -> vector<8x1xf32>
    %93 = vector.broadcast %92 : vector<8x1xf32> to vector<8x8xf32>
    %94 = arith.mulf %89, %93 : vector<8x8xf32>
    %95 = arith.truncf %94 : vector<8x8xf32> to vector<8x8xbf16>
    %96 = arith.truncf %77 : vector<8x8xf32> to vector<8x8xbf16>
    %cst_22 = arith.constant dense<0.000000e+00> : vector<8x8xf32>
    %97 = tpu.matmul %95, %96, %cst_22 {dimension_numbers = #tpu.dot_dimension_numbers<[1], [0], [0], [1], [0, 0, 1, 1], [], []>} : vector<8x8xbf16>, vector<8x8xbf16>, vector<8x8xf32> -> vector<8x8xf32>
    %98 = arith.truncf %43 : vector<8x8xf32> to vector<8x8xbf16>
    %99 = arith.truncf %65 : vector<8x8xf32> to vector<8x8xbf16>
    %cst_23 = arith.constant dense<0.000000e+00> : vector<8x8xf32>
    %100 = tpu.matmul %98, %99, %cst_23 {dimension_numbers = #tpu.dot_dimension_numbers<[1], [1], [0], [0], [0, 0, 1, 0], [], []>} : vector<8x8xbf16>, vector<8x8xbf16>, vector<8x8xf32> -> vector<8x8xf32>
    %cst_24 = arith.constant dense<0xFF800000> : vector<8xf32>
    %101 = vector.multi_reduction <maximumf>, %100, %cst_24 [1] : vector<8x8xf32> to vector<8xf32>
    %102 = vector.shape_cast %101 : vector<8xf32> to vector<8x1xf32>
    %103 = vector.broadcast %102 : vector<8x1xf32> to vector<8x8xf32>
    %104 = arith.subf %100, %103 : vector<8x8xf32>
    %105 = math.exp %104 : vector<8x8xf32>
    %cst_25 = arith.constant dense<0.000000e+00> : vector<8xf32>
    %106 = vector.multi_reduction <add>, %105, %cst_25 [1] : vector<8x8xf32> to vector<8xf32>
    %107 = vector.shape_cast %106 : vector<8xf32> to vector<8x1xf32>
    %108 = tpu.reciprocal %107 {approx = true} : vector<8x1xf32> -> vector<8x1xf32>
    %109 = vector.broadcast %108 : vector<8x1xf32> to vector<8x8xf32>
    %110 = arith.mulf %105, %109 : vector<8x8xf32>
    %111 = arith.truncf %110 : vector<8x8xf32> to vector<8x8xbf16>
    %112 = arith.truncf %78 : vector<8x8xf32> to vector<8x8xbf16>
    %cst_26 = arith.constant dense<0.000000e+00> : vector<8x8xf32>
    %113 = tpu.matmul %111, %112, %cst_26 {dimension_numbers = #tpu.dot_dimension_numbers<[1], [0], [0], [1], [0, 0, 1, 1], [], []>} : vector<8x8xbf16>, vector<8x8xbf16>, vector<8x8xf32> -> vector<8x8xf32>
    %114 = arith.truncf %48 : vector<8x8xf32> to vector<8x8xbf16>
    %115 = arith.truncf %70 : vector<8x8xf32> to vector<8x8xbf16>
    %cst_27 = arith.constant dense<0.000000e+00> : vector<8x8xf32>
    %116 = tpu.matmul %114, %115, %cst_27 {dimension_numbers = #tpu.dot_dimension_numbers<[1], [1], [0], [0], [0, 0, 1, 0], [], []>} : vector<8x8xbf16>, vector<8x8xbf16>, vector<8x8xf32> -> vector<8x8xf32>
    %cst_28 = arith.constant dense<0xFF800000> : vector<8xf32>
    %117 = vector.multi_reduction <maximumf>, %116, %cst_28 [1] : vector<8x8xf32> to vector<8xf32>
    %118 = vector.shape_cast %117 : vector<8xf32> to vector<8x1xf32>
    %119 = vector.broadcast %118 : vector<8x1xf32> to vector<8x8xf32>
    %120 = arith.subf %116, %119 : vector<8x8xf32>
    %121 = math.exp %120 : vector<8x8xf32>
    %cst_29 = arith.constant dense<0.000000e+00> : vector<8xf32>
    %122 = vector.multi_reduction <add>, %121, %cst_29 [1] : vector<8x8xf32> to vector<8xf32>
    %123 = vector.shape_cast %122 : vector<8xf32> to vector<8x1xf32>
    %124 = tpu.reciprocal %123 {approx = true} : vector<8x1xf32> -> vector<8x1xf32>
    %125 = vector.broadcast %124 : vector<8x1xf32> to vector<8x8xf32>
    %126 = arith.mulf %121, %125 : vector<8x8xf32>
    %127 = arith.truncf %126 : vector<8x8xf32> to vector<8x8xbf16>
    %128 = arith.truncf %79 : vector<8x8xf32> to vector<8x8xbf16>
    %cst_30 = arith.constant dense<0.000000e+00> : vector<8x8xf32>
    %129 = tpu.matmul %127, %128, %cst_30 {dimension_numbers = #tpu.dot_dimension_numbers<[1], [0], [0], [1], [0, 0, 1, 1], [], []>} : vector<8x8xbf16>, vector<8x8xbf16>, vector<8x8xf32> -> vector<8x8xf32>
    %130 = arith.truncf %53 : vector<8x8xf32> to vector<8x8xbf16>
    %131 = arith.truncf %75 : vector<8x8xf32> to vector<8x8xbf16>
    %cst_31 = arith.constant dense<0.000000e+00> : vector<8x8xf32>
    %132 = tpu.matmul %130, %131, %cst_31 {dimension_numbers = #tpu.dot_dimension_numbers<[1], [1], [0], [0], [0, 0, 1, 0], [], []>} : vector<8x8xbf16>, vector<8x8xbf16>, vector<8x8xf32> -> vector<8x8xf32>
    %cst_32 = arith.constant dense<0xFF800000> : vector<8xf32>
    %133 = vector.multi_reduction <maximumf>, %132, %cst_32 [1] : vector<8x8xf32> to vector<8xf32>
    %134 = vector.shape_cast %133 : vector<8xf32> to vector<8x1xf32>
    %135 = vector.broadcast %134 : vector<8x1xf32> to vector<8x8xf32>
    %136 = arith.subf %132, %135 : vector<8x8xf32>
    %137 = math.exp %136 : vector<8x8xf32>
    %cst_33 = arith.constant dense<0.000000e+00> : vector<8xf32>
    %138 = vector.multi_reduction <add>, %137, %cst_33 [1] : vector<8x8xf32> to vector<8xf32>
    %139 = vector.shape_cast %138 : vector<8xf32> to vector<8x1xf32>
    %140 = tpu.reciprocal %139 {approx = true} : vector<8x1xf32> -> vector<8x1xf32>
    %141 = vector.broadcast %140 : vector<8x1xf32> to vector<8x8xf32>
    %142 = arith.mulf %137, %141 : vector<8x8xf32>
    %143 = arith.truncf %142 : vector<8x8xf32> to vector<8x8xbf16>
    %144 = arith.truncf %80 : vector<8x8xf32> to vector<8x8xbf16>
    %cst_34 = arith.constant dense<0.000000e+00> : vector<8x8xf32>
    %145 = tpu.matmul %143, %144, %cst_34 {dimension_numbers = #tpu.dot_dimension_numbers<[1], [0], [0], [1], [0, 0, 1, 1], [], []>} : vector<8x8xbf16>, vector<8x8xbf16>, vector<8x8xf32> -> vector<8x8xf32>
    %146 = tpu.concatenate %97, %113, %129, %145 in 1 : vector<8x8xf32>, vector<8x8xf32>, vector<8x8xf32>, vector<8x8xf32> -> vector<8x32xf32>
    %147 = arith.truncf %146 : vector<8x32xf32> to vector<8x32xbf16>
    %cst_35 = arith.constant dense<0.000000e+00> : vector<8x32xf32>
    %148 = tpu.matmul %147, %81, %cst_35 {dimension_numbers = #tpu.dot_dimension_numbers<[1], [0], [0], [1], [0, 0, 1, 1], [], []>} : vector<8x32xbf16>, vector<32x32xbf16>, vector<8x32xf32> -> vector<8x32xf32>
    %149 = arith.addf %1, %148 : vector<8x32xf32>
    %150 = vector.extract_strided_slice %6 {offsets = [2, 0], sizes = [1, 32], strides = [1, 1]} : vector<6x32xf32> to vector<1x32xf32>
    %151 = vector.extract_strided_slice %6 {offsets = [3, 0], sizes = [1, 32], strides = [1, 1]} : vector<6x32xf32> to vector<1x32xf32>
    %cst_36 = arith.constant dense<0.000000e+00> : vector<8xf32>
    %152 = vector.multi_reduction <add>, %149, %cst_36 [1] : vector<8x32xf32> to vector<8xf32>
    %153 = vector.shape_cast %152 : vector<8xf32> to vector<8x1xf32>
    %cst_37 = arith.constant 3.200000e+01 : f32
    %154 = vector.broadcast %cst_37 : f32 to vector<8x1xf32>
    %155 = arith.divf %153, %154 : vector<8x1xf32>
    %156 = vector.broadcast %155 : vector<8x1xf32> to vector<8x32xf32>
    %157 = arith.subf %149, %156 : vector<8x32xf32>
    %158 = arith.mulf %157, %157 : vector<8x32xf32>
    %cst_38 = arith.constant dense<0.000000e+00> : vector<8xf32>
    %159 = vector.multi_reduction <add>, %158, %cst_38 [1] : vector<8x32xf32> to vector<8xf32>
    %160 = vector.shape_cast %159 : vector<8xf32> to vector<8x1xf32>
    %cst_39 = arith.constant 3.200000e+01 : f32
    %161 = vector.broadcast %cst_39 : f32 to vector<8x1xf32>
    %162 = arith.divf %160, %161 : vector<8x1xf32>
    %cst_40 = arith.constant 9.99999997E-7 : f32
    %163 = vector.broadcast %cst_40 : f32 to vector<8x1xf32>
    %164 = arith.addf %162, %163 : vector<8x1xf32>
    %165 = math.rsqrt %164 : vector<8x1xf32>
    %166 = vector.broadcast %165 : vector<8x1xf32> to vector<8x32xf32>
    %167 = arith.mulf %157, %166 : vector<8x32xf32>
    %168 = vector.broadcast %150 : vector<1x32xf32> to vector<8x32xf32>
    %169 = arith.mulf %167, %168 : vector<8x32xf32>
    %170 = vector.broadcast %151 : vector<1x32xf32> to vector<8x32xf32>
    %171 = arith.addf %169, %170 : vector<8x32xf32>
    %172 = arith.truncf %171 : vector<8x32xf32> to vector<8x32xbf16>
    %c0_41 = arith.constant 0 : index
    %c0_42 = arith.constant 0 : index
    %173 = vector.load %arg8[%c0_41, %c0_42] : memref<32x64xbf16, #tpu.memory_space<vmem>>, vector<32x64xbf16>
    %cst_43 = arith.constant dense<0.000000e+00> : vector<8x64xf32>
    %174 = tpu.matmul %172, %173, %cst_43 {dimension_numbers = #tpu.dot_dimension_numbers<[1], [0], [0], [1], [0, 0, 1, 1], [], []>} : vector<8x32xbf16>, vector<32x64xbf16>, vector<8x64xf32> -> vector<8x64xf32>
    %c0_44 = arith.constant 0 : index
    %c0_45 = arith.constant 0 : index
    %c0_46 = arith.constant 0 : index
    %175 = vector.load %arg2[%c0_44, %c0_45, %c0_46] : memref<1x16x32xbf16, #tpu.memory_space<vmem>>, vector<1x16x32xbf16>
    %176 = vector.shape_cast %175 : vector<1x16x32xbf16> to vector<16x32xbf16>
    %c0_47 = arith.constant 0 : index
    %c0_48 = arith.constant 0 : index
    %177 = vector.load %arg9[%c0_47, %c0_48] : memref<32x64xbf16, #tpu.memory_space<vmem>>, vector<32x64xbf16>
    %cst_49 = arith.constant dense<0.000000e+00> : vector<16x64xf32>
    %178 = tpu.matmul %176, %177, %cst_49 {dimension_numbers = #tpu.dot_dimension_numbers<[1], [0], [0], [1], [0, 0, 1, 1], [], []>} : vector<16x32xbf16>, vector<32x64xbf16>, vector<16x64xf32> -> vector<16x64xf32>
    %179 = vector.extract_strided_slice %174 {offsets = [0, 0], sizes = [8, 32], strides = [1, 1]} : vector<8x64xf32> to vector<8x32xf32>
    %180 = vector.extract_strided_slice %174 {offsets = [0, 32], sizes = [8, 32], strides = [1, 1]} : vector<8x64xf32> to vector<8x32xf32>
    %181 = vector.extract_strided_slice %179 {offsets = [0, 0], sizes = [8, 8], strides = [1, 1]} : vector<8x32xf32> to vector<8x8xf32>
    %182 = arith.mulf %181, %3 : vector<8x8xf32>
    %183 = vector.extract_strided_slice %180 {offsets = [0, 0], sizes = [8, 8], strides = [1, 1]} : vector<8x32xf32> to vector<8x8xf32>
    %184 = arith.mulf %183, %5 : vector<8x8xf32>
    %185 = arith.addf %182, %184 : vector<8x8xf32>
    %186 = vector.extract_strided_slice %179 {offsets = [0, 8], sizes = [8, 8], strides = [1, 1]} : vector<8x32xf32> to vector<8x8xf32>
    %187 = arith.mulf %186, %3 : vector<8x8xf32>
    %188 = vector.extract_strided_slice %180 {offsets = [0, 8], sizes = [8, 8], strides = [1, 1]} : vector<8x32xf32> to vector<8x8xf32>
    %189 = arith.mulf %188, %5 : vector<8x8xf32>
    %190 = arith.addf %187, %189 : vector<8x8xf32>
    %191 = vector.extract_strided_slice %179 {offsets = [0, 16], sizes = [8, 8], strides = [1, 1]} : vector<8x32xf32> to vector<8x8xf32>
    %192 = arith.mulf %191, %3 : vector<8x8xf32>
    %193 = vector.extract_strided_slice %180 {offsets = [0, 16], sizes = [8, 8], strides = [1, 1]} : vector<8x32xf32> to vector<8x8xf32>
    %194 = arith.mulf %193, %5 : vector<8x8xf32>
    %195 = arith.addf %192, %194 : vector<8x8xf32>
    %196 = vector.extract_strided_slice %179 {offsets = [0, 24], sizes = [8, 8], strides = [1, 1]} : vector<8x32xf32> to vector<8x8xf32>
    %197 = arith.mulf %196, %3 : vector<8x8xf32>
    %198 = vector.extract_strided_slice %180 {offsets = [0, 24], sizes = [8, 8], strides = [1, 1]} : vector<8x32xf32> to vector<8x8xf32>
    %199 = arith.mulf %198, %5 : vector<8x8xf32>
    %200 = arith.addf %197, %199 : vector<8x8xf32>
    %201 = vector.extract_strided_slice %178 {offsets = [0, 0], sizes = [16, 32], strides = [1, 1]} : vector<16x64xf32> to vector<16x32xf32>
    %202 = vector.extract_strided_slice %201 {offsets = [0, 0], sizes = [16, 8], strides = [1, 1]} : vector<16x32xf32> to vector<16x8xf32>
    %203 = vector.extract_strided_slice %201 {offsets = [0, 8], sizes = [16, 8], strides = [1, 1]} : vector<16x32xf32> to vector<16x8xf32>
    %204 = vector.extract_strided_slice %201 {offsets = [0, 16], sizes = [16, 8], strides = [1, 1]} : vector<16x32xf32> to vector<16x8xf32>
    %205 = vector.extract_strided_slice %201 {offsets = [0, 24], sizes = [16, 8], strides = [1, 1]} : vector<16x32xf32> to vector<16x8xf32>
    %206 = vector.extract_strided_slice %178 {offsets = [0, 32], sizes = [16, 32], strides = [1, 1]} : vector<16x64xf32> to vector<16x32xf32>
    %207 = vector.extract_strided_slice %206 {offsets = [0, 0], sizes = [16, 8], strides = [1, 1]} : vector<16x32xf32> to vector<16x8xf32>
    %208 = vector.extract_strided_slice %206 {offsets = [0, 8], sizes = [16, 8], strides = [1, 1]} : vector<16x32xf32> to vector<16x8xf32>
    %209 = vector.extract_strided_slice %206 {offsets = [0, 16], sizes = [16, 8], strides = [1, 1]} : vector<16x32xf32> to vector<16x8xf32>
    %210 = vector.extract_strided_slice %206 {offsets = [0, 24], sizes = [16, 8], strides = [1, 1]} : vector<16x32xf32> to vector<16x8xf32>
    %c0_50 = arith.constant 0 : index
    %c0_51 = arith.constant 0 : index
    %211 = vector.load %arg10[%c0_50, %c0_51] : memref<32x32xbf16, #tpu.memory_space<vmem>>, vector<32x32xbf16>
    %212 = arith.truncf %185 : vector<8x8xf32> to vector<8x8xbf16>
    %213 = arith.truncf %202 : vector<16x8xf32> to vector<16x8xbf16>
    %cst_52 = arith.constant dense<0.000000e+00> : vector<8x16xf32>
    %214 = tpu.matmul %212, %213, %cst_52 {dimension_numbers = #tpu.dot_dimension_numbers<[1], [1], [0], [0], [0, 0, 1, 0], [], []>} : vector<8x8xbf16>, vector<16x8xbf16>, vector<8x16xf32> -> vector<8x16xf32>
    %cst_53 = arith.constant dense<0xFF800000> : vector<8xf32>
    %215 = vector.multi_reduction <maximumf>, %214, %cst_53 [1] : vector<8x16xf32> to vector<8xf32>
    %216 = vector.shape_cast %215 : vector<8xf32> to vector<8x1xf32>
    %217 = vector.broadcast %216 : vector<8x1xf32> to vector<8x16xf32>
    %218 = arith.subf %214, %217 : vector<8x16xf32>
    %219 = math.exp %218 : vector<8x16xf32>
    %cst_54 = arith.constant dense<0.000000e+00> : vector<8xf32>
    %220 = vector.multi_reduction <add>, %219, %cst_54 [1] : vector<8x16xf32> to vector<8xf32>
    %221 = vector.shape_cast %220 : vector<8xf32> to vector<8x1xf32>
    %222 = tpu.reciprocal %221 {approx = true} : vector<8x1xf32> -> vector<8x1xf32>
    %223 = vector.broadcast %222 : vector<8x1xf32> to vector<8x16xf32>
    %224 = arith.mulf %219, %223 : vector<8x16xf32>
    %225 = arith.truncf %224 : vector<8x16xf32> to vector<8x16xbf16>
    %226 = arith.truncf %207 : vector<16x8xf32> to vector<16x8xbf16>
    %cst_55 = arith.constant dense<0.000000e+00> : vector<8x8xf32>
    %227 = tpu.matmul %225, %226, %cst_55 {dimension_numbers = #tpu.dot_dimension_numbers<[1], [0], [0], [1], [0, 0, 1, 1], [], []>} : vector<8x16xbf16>, vector<16x8xbf16>, vector<8x8xf32> -> vector<8x8xf32>
    %228 = arith.truncf %190 : vector<8x8xf32> to vector<8x8xbf16>
    %229 = arith.truncf %203 : vector<16x8xf32> to vector<16x8xbf16>
    %cst_56 = arith.constant dense<0.000000e+00> : vector<8x16xf32>
    %230 = tpu.matmul %228, %229, %cst_56 {dimension_numbers = #tpu.dot_dimension_numbers<[1], [1], [0], [0], [0, 0, 1, 0], [], []>} : vector<8x8xbf16>, vector<16x8xbf16>, vector<8x16xf32> -> vector<8x16xf32>
    %cst_57 = arith.constant dense<0xFF800000> : vector<8xf32>
    %231 = vector.multi_reduction <maximumf>, %230, %cst_57 [1] : vector<8x16xf32> to vector<8xf32>
    %232 = vector.shape_cast %231 : vector<8xf32> to vector<8x1xf32>
    %233 = vector.broadcast %232 : vector<8x1xf32> to vector<8x16xf32>
    %234 = arith.subf %230, %233 : vector<8x16xf32>
    %235 = math.exp %234 : vector<8x16xf32>
    %cst_58 = arith.constant dense<0.000000e+00> : vector<8xf32>
    %236 = vector.multi_reduction <add>, %235, %cst_58 [1] : vector<8x16xf32> to vector<8xf32>
    %237 = vector.shape_cast %236 : vector<8xf32> to vector<8x1xf32>
    %238 = tpu.reciprocal %237 {approx = true} : vector<8x1xf32> -> vector<8x1xf32>
    %239 = vector.broadcast %238 : vector<8x1xf32> to vector<8x16xf32>
    %240 = arith.mulf %235, %239 : vector<8x16xf32>
    %241 = arith.truncf %240 : vector<8x16xf32> to vector<8x16xbf16>
    %242 = arith.truncf %208 : vector<16x8xf32> to vector<16x8xbf16>
    %cst_59 = arith.constant dense<0.000000e+00> : vector<8x8xf32>
    %243 = tpu.matmul %241, %242, %cst_59 {dimension_numbers = #tpu.dot_dimension_numbers<[1], [0], [0], [1], [0, 0, 1, 1], [], []>} : vector<8x16xbf16>, vector<16x8xbf16>, vector<8x8xf32> -> vector<8x8xf32>
    %244 = arith.truncf %195 : vector<8x8xf32> to vector<8x8xbf16>
    %245 = arith.truncf %204 : vector<16x8xf32> to vector<16x8xbf16>
    %cst_60 = arith.constant dense<0.000000e+00> : vector<8x16xf32>
    %246 = tpu.matmul %244, %245, %cst_60 {dimension_numbers = #tpu.dot_dimension_numbers<[1], [1], [0], [0], [0, 0, 1, 0], [], []>} : vector<8x8xbf16>, vector<16x8xbf16>, vector<8x16xf32> -> vector<8x16xf32>
    %cst_61 = arith.constant dense<0xFF800000> : vector<8xf32>
    %247 = vector.multi_reduction <maximumf>, %246, %cst_61 [1] : vector<8x16xf32> to vector<8xf32>
    %248 = vector.shape_cast %247 : vector<8xf32> to vector<8x1xf32>
    %249 = vector.broadcast %248 : vector<8x1xf32> to vector<8x16xf32>
    %250 = arith.subf %246, %249 : vector<8x16xf32>
    %251 = math.exp %250 : vector<8x16xf32>
    %cst_62 = arith.constant dense<0.000000e+00> : vector<8xf32>
    %252 = vector.multi_reduction <add>, %251, %cst_62 [1] : vector<8x16xf32> to vector<8xf32>
    %253 = vector.shape_cast %252 : vector<8xf32> to vector<8x1xf32>
    %254 = tpu.reciprocal %253 {approx = true} : vector<8x1xf32> -> vector<8x1xf32>
    %255 = vector.broadcast %254 : vector<8x1xf32> to vector<8x16xf32>
    %256 = arith.mulf %251, %255 : vector<8x16xf32>
    %257 = arith.truncf %256 : vector<8x16xf32> to vector<8x16xbf16>
    %258 = arith.truncf %209 : vector<16x8xf32> to vector<16x8xbf16>
    %cst_63 = arith.constant dense<0.000000e+00> : vector<8x8xf32>
    %259 = tpu.matmul %257, %258, %cst_63 {dimension_numbers = #tpu.dot_dimension_numbers<[1], [0], [0], [1], [0, 0, 1, 1], [], []>} : vector<8x16xbf16>, vector<16x8xbf16>, vector<8x8xf32> -> vector<8x8xf32>
    %260 = arith.truncf %200 : vector<8x8xf32> to vector<8x8xbf16>
    %261 = arith.truncf %205 : vector<16x8xf32> to vector<16x8xbf16>
    %cst_64 = arith.constant dense<0.000000e+00> : vector<8x16xf32>
    %262 = tpu.matmul %260, %261, %cst_64 {dimension_numbers = #tpu.dot_dimension_numbers<[1], [1], [0], [0], [0, 0, 1, 0], [], []>} : vector<8x8xbf16>, vector<16x8xbf16>, vector<8x16xf32> -> vector<8x16xf32>
    %cst_65 = arith.constant dense<0xFF800000> : vector<8xf32>
    %263 = vector.multi_reduction <maximumf>, %262, %cst_65 [1] : vector<8x16xf32> to vector<8xf32>
    %264 = vector.shape_cast %263 : vector<8xf32> to vector<8x1xf32>
    %265 = vector.broadcast %264 : vector<8x1xf32> to vector<8x16xf32>
    %266 = arith.subf %262, %265 : vector<8x16xf32>
    %267 = math.exp %266 : vector<8x16xf32>
    %cst_66 = arith.constant dense<0.000000e+00> : vector<8xf32>
    %268 = vector.multi_reduction <add>, %267, %cst_66 [1] : vector<8x16xf32> to vector<8xf32>
    %269 = vector.shape_cast %268 : vector<8xf32> to vector<8x1xf32>
    %270 = tpu.reciprocal %269 {approx = true} : vector<8x1xf32> -> vector<8x1xf32>
    %271 = vector.broadcast %270 : vector<8x1xf32> to vector<8x16xf32>
    %272 = arith.mulf %267, %271 : vector<8x16xf32>
    %273 = arith.truncf %272 : vector<8x16xf32> to vector<8x16xbf16>
    %274 = arith.truncf %210 : vector<16x8xf32> to vector<16x8xbf16>
    %cst_67 = arith.constant dense<0.000000e+00> : vector<8x8xf32>
    %275 = tpu.matmul %273, %274, %cst_67 {dimension_numbers = #tpu.dot_dimension_numbers<[1], [0], [0], [1], [0, 0, 1, 1], [], []>} : vector<8x16xbf16>, vector<16x8xbf16>, vector<8x8xf32> -> vector<8x8xf32>
    %276 = tpu.concatenate %227, %243, %259, %275 in 1 : vector<8x8xf32>, vector<8x8xf32>, vector<8x8xf32>, vector<8x8xf32> -> vector<8x32xf32>
    %277 = arith.truncf %276 : vector<8x32xf32> to vector<8x32xbf16>
    %cst_68 = arith.constant dense<0.000000e+00> : vector<8x32xf32>
    %278 = tpu.matmul %277, %211, %cst_68 {dimension_numbers = #tpu.dot_dimension_numbers<[1], [0], [0], [1], [0, 0, 1, 1], [], []>} : vector<8x32xbf16>, vector<32x32xbf16>, vector<8x32xf32> -> vector<8x32xf32>
    %279 = arith.addf %149, %278 : vector<8x32xf32>
    %280 = vector.extract_strided_slice %6 {offsets = [4, 0], sizes = [1, 32], strides = [1, 1]} : vector<6x32xf32> to vector<1x32xf32>
    %281 = vector.extract_strided_slice %6 {offsets = [5, 0], sizes = [1, 32], strides = [1, 1]} : vector<6x32xf32> to vector<1x32xf32>
    %cst_69 = arith.constant dense<0.000000e+00> : vector<8xf32>
    %282 = vector.multi_reduction <add>, %279, %cst_69 [1] : vector<8x32xf32> to vector<8xf32>
    %283 = vector.shape_cast %282 : vector<8xf32> to vector<8x1xf32>
    %cst_70 = arith.constant 3.200000e+01 : f32
    %284 = vector.broadcast %cst_70 : f32 to vector<8x1xf32>
    %285 = arith.divf %283, %284 : vector<8x1xf32>
    %286 = vector.broadcast %285 : vector<8x1xf32> to vector<8x32xf32>
    %287 = arith.subf %279, %286 : vector<8x32xf32>
    %288 = arith.mulf %287, %287 : vector<8x32xf32>
    %cst_71 = arith.constant dense<0.000000e+00> : vector<8xf32>
    %289 = vector.multi_reduction <add>, %288, %cst_71 [1] : vector<8x32xf32> to vector<8xf32>
    %290 = vector.shape_cast %289 : vector<8xf32> to vector<8x1xf32>
    %cst_72 = arith.constant 3.200000e+01 : f32
    %291 = vector.broadcast %cst_72 : f32 to vector<8x1xf32>
    %292 = arith.divf %290, %291 : vector<8x1xf32>
    %cst_73 = arith.constant 9.99999997E-7 : f32
    %293 = vector.broadcast %cst_73 : f32 to vector<8x1xf32>
    %294 = arith.addf %292, %293 : vector<8x1xf32>
    %295 = math.rsqrt %294 : vector<8x1xf32>
    %296 = vector.broadcast %295 : vector<8x1xf32> to vector<8x32xf32>
    %297 = arith.mulf %287, %296 : vector<8x32xf32>
    %298 = vector.broadcast %280 : vector<1x32xf32> to vector<8x32xf32>
    %299 = arith.mulf %297, %298 : vector<8x32xf32>
    %300 = vector.broadcast %281 : vector<1x32xf32> to vector<8x32xf32>
    %301 = arith.addf %299, %300 : vector<8x32xf32>
    %302 = arith.truncf %301 : vector<8x32xf32> to vector<8x32xbf16>
    %c0_74 = arith.constant 0 : index
    %c0_75 = arith.constant 0 : index
    %303 = vector.load %arg11[%c0_74, %c0_75] : memref<32x128xbf16, #tpu.memory_space<vmem>>, vector<32x128xbf16>
    %cst_76 = arith.constant dense<0.000000e+00> : vector<8x128xf32>
    %304 = tpu.matmul %302, %303, %cst_76 {dimension_numbers = #tpu.dot_dimension_numbers<[1], [0], [0], [1], [0, 0, 1, 1], [], []>} : vector<8x32xbf16>, vector<32x128xbf16>, vector<8x128xf32> -> vector<8x128xf32>
    %305 = vector.extract_strided_slice %304 {offsets = [0, 0], sizes = [8, 64], strides = [1, 1]} : vector<8x128xf32> to vector<8x64xf32>
    %306 = vector.extract_strided_slice %304 {offsets = [0, 64], sizes = [8, 64], strides = [1, 1]} : vector<8x128xf32> to vector<8x64xf32>
    %cst_77 = arith.constant 5.000000e-01 : f32
    %307 = vector.broadcast %cst_77 : f32 to vector<8x64xf32>
    %308 = arith.mulf %307, %305 : vector<8x64xf32>
    %309 = math.tanh %308 : vector<8x64xf32>
    %cst_78 = arith.constant 1.000000e+00 : f32
    %310 = vector.broadcast %cst_78 : f32 to vector<8x64xf32>
    %311 = arith.addf %310, %309 : vector<8x64xf32>
    %cst_79 = arith.constant 5.000000e-01 : f32
    %312 = vector.broadcast %cst_79 : f32 to vector<8x64xf32>
    %313 = arith.mulf %312, %311 : vector<8x64xf32>
    %314 = arith.mulf %305, %313 : vector<8x64xf32>
    %315 = arith.mulf %314, %306 : vector<8x64xf32>
    %316 = arith.truncf %315 : vector<8x64xf32> to vector<8x64xbf16>
    %c0_80 = arith.constant 0 : index
    %c0_81 = arith.constant 0 : index
    %317 = vector.load %arg12[%c0_80, %c0_81] : memref<64x32xbf16, #tpu.memory_space<vmem>>, vector<64x32xbf16>
    %cst_82 = arith.constant dense<0.000000e+00> : vector<8x32xf32>
    %318 = tpu.matmul %316, %317, %cst_82 {dimension_numbers = #tpu.dot_dimension_numbers<[1], [0], [0], [1], [0, 0, 1, 1], [], []>} : vector<8x64xbf16>, vector<64x32xbf16>, vector<8x32xf32> -> vector<8x32xf32>
    %319 = arith.addf %279, %318 : vector<8x32xf32>
    %c0_83 = arith.constant 0 : index
    %c0_84 = arith.constant 0 : index
    %c0_85 = arith.constant 0 : index
    %320 = vector.load %arg13[%c0_83, %c0_84, %c0_85] : memref<1x8x32xf32, #tpu.memory_space<vmem>>, vector<1x8x32xf32>
    %321 = vector.shape_cast %320 : vector<1x8x32xf32> to vector<8x32xf32>
    %322 = vector.shape_cast %319 : vector<8x32xf32> to vector<1x8x32xf32>
    tpu.vector_store %arg13[%c0_83, %c0_84, %c0_85], %322 {strides = array<i32>} : memref<1x8x32xf32, #tpu.memory_space<vmem>>, vector<1x8x32xf32>,
    return
  }
  func.func @transform_0(%arg0: i32) -> (i32, i32, i32) {
    %c0_i32 = arith.constant 0 : i32
    %c0_i32_0 = arith.constant 0 : i32
    %c0_i32_1 = arith.constant 0 : i32
    return %arg0, %c0_i32, %c0_i32_0 : i32, i32, i32
  }
  func.func @transform_1(%arg0: i32) -> (i32, i32, i32) {
    %c0_i32 = arith.constant 0 : i32
    %c0_i32_0 = arith.constant 0 : i32
    %c0_i32_1 = arith.constant 0 : i32
    return %arg0, %c0_i32, %c0_i32_0 : i32, i32, i32
  }
  func.func @transform_2(%arg0: i32) -> (i32, i32, i32) {
    %c0_i32 = arith.constant 0 : i32
    %c0_i32_0 = arith.constant 0 : i32
    %c0_i32_1 = arith.constant 0 : i32
    return %arg0, %c0_i32, %c0_i32_0 : i32, i32, i32
  }
  func.func @transform_3(%arg0: i32) -> (i32, i32, i32) {
    %c0_i32 = arith.constant 0 : i32
    %c0_i32_0 = arith.constant 0 : i32
    %c0_i32_1 = arith.constant 0 : i32
    return %arg0, %c0_i32, %c0_i32_0 : i32, i32, i32
  }
  func.func @transform_4(%arg0: i32) -> (i32, i32) {
    %c0_i32 = arith.constant 0 : i32
    %c0_i32_0 = arith.constant 0 : i32
    %c0_i32_1 = arith.constant 0 : i32
    return %c0_i32, %c0_i32_0 : i32, i32
  }
  func.func @transform_5(%arg0: i32) -> (i32, i32) {
    %c0_i32 = arith.constant 0 : i32
    %c0_i32_0 = arith.constant 0 : i32
    %c0_i32_1 = arith.constant 0 : i32
    return %c0_i32, %c0_i32_0 : i32, i32
  }
  func.func @transform_6(%arg0: i32) -> (i32, i32) {
    %c0_i32 = arith.constant 0 : i32
    %c0_i32_0 = arith.constant 0 : i32
    %c0_i32_1 = arith.constant 0 : i32
    return %c0_i32, %c0_i32_0 : i32, i32
  }
  func.func @transform_7(%arg0: i32) -> (i32, i32) {
    %c0_i32 = arith.constant 0 : i32
    %c0_i32_0 = arith.constant 0 : i32
    %c0_i32_1 = arith.constant 0 : i32
    return %c0_i32, %c0_i32_0 : i32, i32
  }
  func.func @transform_8(%arg0: i32) -> (i32, i32) {
    %c0_i32 = arith.constant 0 : i32
    %c0_i32_0 = arith.constant 0 : i32
    %c0_i32_1 = arith.constant 0 : i32
    return %c0_i32, %c0_i32_0 : i32, i32
  }
  func.func @transform_9(%arg0: i32) -> (i32, i32) {
    %c0_i32 = arith.constant 0 : i32
    %c0_i32_0 = arith.constant 0 : i32
    %c0_i32_1 = arith.constant 0 : i32
    return %c0_i32, %c0_i32_0 : i32, i32
  }
  func.func @transform_10(%arg0: i32) -> (i32, i32) {
    %c0_i32 = arith.constant 0 : i32
    %c0_i32_0 = arith.constant 0 : i32
    %c0_i32_1 = arith.constant 0 : i32
    return %c0_i32, %c0_i32_0 : i32, i32
  }
  func.func @transform_11(%arg0: i32) -> (i32, i32) {
    %c0_i32 = arith.constant 0 : i32
    %c0_i32_0 = arith.constant 0 : i32
    %c0_i32_1 = arith.constant 0 : i32
    return %c0_i32, %c0_i32_0 : i32, i32
  }
  func.func @transform_12(%arg0: i32) -> (i32, i32, i32) {
    %c0_i32 = arith.constant 0 : i32
    %c0_i32_0 = arith.constant 0 : i32
    %c0_i32_1 = arith.constant 0 : i32
    return %arg0, %c0_i32, %c0_i32_0 : i32, i32, i32
  }
}

</mosaic_0001>

<bundles_post_ra>
// kernel: tpu_custom_call.1
= control target key start
LH: loop header
LB: loop body
LE: loop exit
PB: predicated region body
PF: predicated region fallthrough
CT: control target
= control target key end

     0   :  { %s3137_s0 = inlined_call_operand.vmem [shape: f32[2,8,32], index: 0, kind: input, shape index: {}]   ;;  %s3138_s1 = inlined_call_operand.hbm [shape: bf16[2,16,32], index: 1, kind: input, shape index: {}]   ;;  %s3139_s2 = inlined_call_operand.hbm [shape: f32[2,8,8], index: 2, kind: input, shape index: {}]   ;;  %s3140_s3 = inlined_call_operand.hbm [shape: f32[2,8,8], index: 3, kind: input, shape index: {}]   ;;  %s3141_s4 = inlined_call_operand.hbm [shape: f32[6,32], index: 4, kind: input, shape index: {}]   ;;  %s3142_s5 = inlined_call_operand.vmem [shape: bf16[32,160], index: 5, kind: input, shape index: {}]   ;;  %s3143_s6 = inlined_call_operand.hbm [shape: bf16[32,32], index: 6, kind: input, shape index: {}]   ;;  %s3144_s7 = inlined_call_operand.hbm [shape: bf16[32,64], index: 7, kind: input, shape index: {}]   ;;  %s3145_s8 = inlined_call_operand.hbm [shape: bf16[32,64], index: 8, kind: input, shape index: {}]   ;;  %s3146_s9 = inlined_call_operand.hbm [shape: bf16[32,32], index: 9, kind: input, shape index: {}]   ;;  %s3147_s10 = inlined_call_operand.hbm [shape: bf16[32,128], index: 10, kind: input, shape index: {}]   ;;  %s3148_s11 = inlined_call_operand.vmem [shape: bf16[64,32], index: 11, kind: input, shape index: {}]   ;;  %s3149_s12 = inlined_call_operand.hbm [shape: f32[2,8,32], index: 12, kind: output, shape index: {}]  }
   0x1   :  { %3164 = sst [smem:[#allocation30_spill]] %s3139_s2 }
   0x2   :  { %3165 = sst [smem:[#allocation31_spill]] %s3141_s4 }
   0x3   :  { %3166 = sst [smem:[#allocation32_spill]] %s3143_s6 }
   0x4   :  { %3167 = sst [smem:[#allocation33_spill]] %s3144_s7 }
   0x5   :  { %3168 = sst [smem:[#allocation34_spill]] %s3145_s8 }
   0x6   :  { %3169 = sst [smem:[#allocation35_spill]] %s3146_s9 }
   0x7   :  { %3170 = sst [smem:[#allocation36_spill]] %s3149_s12 }
   0x8   :  { %17 = vsyncpa [#allocation3], 0 }
   0x9   :  { %19 = vsyncpa [#allocation3 + $0x1], 0 }
   0xa   :  { %20 = vsyncpa [#allocation6], 0 }
   0xb   :  { %22 = vsyncpa [#allocation6 + $0x1], 0 }
   0xc   :  { %23 = vsyncpa [#allocation9], 0 }
   0xd   :  { %24 = vsyncpa [#allocation12], 0 }
   0xe   :  { %25 = vsyncpa [#allocation15], 0 }
   0xf   :  { %26 = vsyncpa [#allocation4], 0 }
  0x10   :  { %28 = vsyncpa [#allocation4 + $0x1], 0  ;;  %s2597_s21 = smov 0   ;;  %s2599_s22 = smov 0  }
  0x11   :  { %s2601_s23 = smov 0   ;;  %s2603_s24 = smov 0  }
  0x12 LB: > { %3171 = sst [smem:[#allocation24_spill]] %s2494_s21  ;;  %s2621_s28 = sadd.s32 4294967295, %s2506_s24   ;;  %s2506_s24 = sphi %s2603_s24, %s3205_s24   ;;  %s2502_s23 = sphi %s2601_s23, %s3209_s23   ;;  %s2498_s22 = sphi %s2599_s22, %s3208_s22   ;;  %s2494_s21 = sphi %s2597_s21, %s3207_s21  }
  0x13   : > { %3172 = sst [smem:[#allocation25_spill]] %s2506_s24  ;;  %p1826_p0 = scmp.ge.s32.totalorder %s2506_s24, 1 }
  0x14   : > { %s3173_s4 = sld [smem:[#allocation31_spill]]  ;;  %p3160_p1 = scmp.eq.s32.totalorder %s2621_s28, 0 }
  0x15   : > { %p337_p2 = scmp.lt.s32.totalorder %s2506_s24, 3  ;;  %s2508_s30 = smov [#allocation8]  }
  0x16   : > { %s351_s13 = sshll.u32 %s2508_s30, 4  ;;  %s3175_s7 = sld [smem:[#allocation33_spill]]  ;;  %s352_s13 = int_to_ptr.vmem [resolvable:$true] %s351_s13 }
  0x17   : > { %p2626_p3 = pnand %p1826_p0, %p337_p2  ;;  %s3177_s9 = sld [smem:[#allocation35_spill]] }
  0x18   : > { %s2509_s25 = smov [#allocation11]   ;;  %s3150_s30 = smov 64  }
  0x19   : > { %p2009_p5 = pneg %p2626_p3  ;;  %s379_s26 = sshll.u32 %s2509_s25, 4  ;;  %s380_s26 = int_to_ptr.vmem [resolvable:$true] %s379_s26 }
  0x1a   : > { %s349_s27 = sshll.u32 %s3173_s4, 4  ;;  %s3152_s14 = smov 4   ;;  %s350_s27 = int_to_ptr.hbm [resolvable:$true] %s349_s27 }
  0x1b   : > { %p2638_p6 = pnand %p2009_p5, %p3160_p1  ;;  %s2512_s15 = smov [#allocation14]  }
  0x1c   : > { %s377_s16 = sshll.u32 %s3175_s7, 4  ;;  %s407_s18 = sshll.u32 %s2512_s15, 4  ;;  %s378_s16 = int_to_ptr.hbm [resolvable:$true] %s377_s16  ;;  %s408_s18 = int_to_ptr.vmem [resolvable:$true] %s407_s18 }
  0x1d   : > { %s405_s20 = sshll.u32 %s3177_s9, 4  ;;  %s67_s19 = sadd.s32 1, %s2502_s23  ;;  %s406_s20 = int_to_ptr.hbm [resolvable:$true] %s405_s20 }
  0x1e   : > { %2012 = dma.hbm_to_vmem [thread:$0]  (!%p2638_p6), %s350_s27, 128, %s352_s13, [#allocation9]  }
  0x1f   : > { %2018 = dma.hbm_to_vmem [thread:$0]  (!%p2638_p6), %s378_s16, 256, %s380_s26, [#allocation12], %s3150_s30, %s3150_s30, %s3152_s14  }
  0x20   : > { %2024 = dma.hbm_to_vmem [thread:$0]  (!%p2638_p6), %s406_s20, 256, %s408_s18, [#allocation15], %s3150_s30, %s3150_s30, %s3152_s14  }
  0x21   : > { %s1825_s27 = sadd.s32 4294967294, %s2506_s24   ;;  %s2659_s13 = sadd.s32 1, %s2506_s24  }
  0x22   : > { %3178 = sst [smem:[#allocation26_spill]] %s2659_s13  ;;  %s64_s25 = ssub.s32 %s2506_s24, %s2659_s13 }
  0x23   : > { %p74_p7 = scmp.ne.s32.totalorder %s2502_s23, %s2498_s22  ;;  %p65_p8 = scmp.eq.s32.totalorder %s64_s25, 0 }
  0x24   : > { %p75_p9 = scmp.eq.s32.totalorder %s2506_s24, 0  ;;  %p80_p10 = scmp.ne.s32.totalorder %s2498_s22, %s2494_s21 }
  0x25   : > { %p324_p11 = scmp.eq.s32.totalorder %s2621_s28, 1  ;;  %p330_p2 = scmp.eq.s32.totalorder %s1825_s27, 1 }
  0x26   : > { %s2671_s16 = scalar_select %p65_p8, %s2502_s23, %s67_s19  }
  0x27   : > { %p76_p12 = por %p75_p9, %p74_p7  ;;  %p2675_p13 = por %p3160_p1, %p80_p10 }
  0x28   : > { %3179 = sst [smem:[#allocation27_spill]] %s2671_s16  ;;  %p2679_p0 = por %p324_p11, %p74_p7 }
  0x29   : > { %p2048_p5 = scmp.lt.s32.totalorder %s2506_s24, 2  ;;  %s3154_s15 = sand.u32 1, %s2502_s23  }
  0x2a   : > { %s3181_s26 = scalar_select %p2679_p0, 1, 0 }
  0x2b   : > { %p2685_p4 = por %p330_p2, %p80_p10  ;;  %s2691_s19 = sshll.u32 %s3154_s15, 3 }
  0x2c   : > { %3182 = sst [smem:[#allocation28_spill]] %s3181_s26  ;;  %s2694_s25 = sshll.u32 %s2506_s24, 3 }
  0x2d   : > { %s3183_s18 = scalar_select %p2685_p4, 1, 0 }
  0x2e   : > { %p2700_p7 = pnand %p2048_p5, %p76_p12  ;;  %s467_s7 = sand.u32 1, %s2506_s24  }
  0x2f   : > { %3184 = sst [smem:[#allocation29_spill]] %s3183_s18  ;;  %s471_s18 = scalar_lea.vmem [#allocation5], %s2691_s19 }
  0x30   : > { %s3186_s2 = sld [smem:[#allocation30_spill]]  ;;  %s479_s21 = sshll.u32 %s471_s18, 4  ;;  %s480_s21 = int_to_ptr.vmem [resolvable:$true] %s479_s21 }
  0x31   : > { %s2710_s12 = scalar_lea.sflag [#allocation6], %s467_s7  ;;  %p2248_p9 = pneg %p2700_p7 }
  0x36   : > { %s475_s15 = scalar_lea.hbm %s3186_s2, %s2694_s25  ;;  %s2251_s16 = scalar_lea.hbm %s3186_s2, 16 }
  0x37   : > { %s477_s13 = sshll.u32 %s475_s15, 4  ;;  %s478_s13 = int_to_ptr.hbm [resolvable:$true] %s477_s13 }
  0x38   : > { %s2244_s30 = sshra.s32 %s478_s13, 4  ;;  %s2245_s30 = int_to_ptr.hbm [resolvable:$true] %s2244_s30 }
  0x39   : > { %s2246_s14 = scalar_lea.hbm %s2245_s30, 8  ;;  %p2252_p12 = scmp.lt.s32.totalorder %s2245_s30, %s3186_s2 }
  0x3a   : > { %p2247_p8 = scmp.ne.s32.totalorder %s2245_s30, %s2246_s14  ;;  %p2253_p2 = scmp.lt.s32.totalorder %s2251_s16, %s2246_s14 }
  0x3c   : > { %p2249_p10 = pnand %p2248_p9, %p2247_p8  ;;  %p2254_p5 = por %p2253_p2, %p2252_p12 }
  0x3e   : > { %p2250_p11 = pneg %p2249_p10 }
  0x40   : > { %p2255_p1 = pnand %p2254_p5, %p2250_p11 }
  0x42   : > { %2258 = shalt.err (!%p2255_p1)
}
  0x43   : > { %2034 = dma.hbm_to_vmem [thread:$0]  (!%p2700_p7), %s478_s13, 128, %s480_s21, %s2710_s12  }
  0x44   : > { %s3187_s6 = sld [smem:[#allocation32_spill]]  ;;  %s2513_s9 = smov [#allocation10]  }
  0x45   : > { %s365_s26 = sshll.u32 %s2513_s9, 4  ;;  %s3188_s8 = sld [smem:[#allocation34_spill]]  ;;  %s366_s26 = int_to_ptr.vmem [resolvable:$true] %s365_s26 }
  0x46   : > { %s3189_s15 = smov 4   ;;  %s3190_s18 = smov 64  }
  0x47   : > { %s2514_s21 = smov [#allocation13]   ;;  %s419_s9 = sshll.u32 %s3147_s10, 4  ;;  %s420_s9 = int_to_ptr.hbm [resolvable:$true] %s419_s9 }
  0x48   : > { %s393_s24 = sshll.u32 %s2514_s21, 4  ;;  %s2515_s2 = smov [#allocation16]   ;;  %s394_s24 = int_to_ptr.vmem [resolvable:$true] %s393_s24 }
  0x49   : > { %s449_s21 = scalar_lea.vmem [#allocation2], %s2691_s19  ;;  %s3192_s7 = sand.u32 1, %s2502_s23  }
  0x4a   : > { %s363_s4 = sshll.u32 %s3187_s6, 4  ;;  %s421_s6 = sshll.u32 %s2515_s2, 4  ;;  %s364_s4 = int_to_ptr.hbm [resolvable:$true] %s363_s4  ;;  %s422_s6 = int_to_ptr.vmem [resolvable:$true] %s421_s6 }
  0x4b   : > { %s391_s16 = sshll.u32 %s3188_s8, 4  ;;  %s457_s13 = sshll.u32 %s449_s21, 4  ;;  %s392_s16 = int_to_ptr.hbm [resolvable:$true] %s391_s16  ;;  %s458_s13 = int_to_ptr.vmem [resolvable:$true] %s457_s13 }
  0x4c   : > { %2015 = dma.hbm_to_vmem [thread:$0]  (!%p2638_p6), %s364_s4, 256, %s366_s26, [#allocation9], %s3190_s18, %s3190_s18, %s3189_s15  }
  0x4d   : > { %2021 = dma.hbm_to_vmem [thread:$0]  (!%p2638_p6), %s392_s16, 256, %s394_s24, [#allocation12], %s3190_s18, %s3190_s18, %s3189_s15  }
  0x4e   : > { %s3191_s26 = scalar_lea.hbm %s3138_s1, %s2694_s25  ;;  %s446_s8 = scalar_lea.sflag [#allocation3], %s3192_s7 }
  0x4f   : > { %s455_s4 = sshll.u32 %s3191_s26, 4  ;;  %s2371_s14 = scalar_lea.hbm %s3138_s1, 16  ;;  %s456_s4 = int_to_ptr.hbm [resolvable:$true] %s455_s4 }
  0x50   : > { %2027 = dma.hbm_to_vmem [thread:$0]  (!%p2638_p6), %s420_s9, 256, %s422_s6, [#allocation15], %s3190_s18, %s3190_s18, %s3189_s15  }
  0x51   : > { %s2364_s16 = sshra.s32 %s456_s4, 4  ;;  %s2365_s16 = int_to_ptr.hbm [resolvable:$true] %s2364_s16 }
  0x52   : > { %s2366_s24 = scalar_lea.hbm %s2365_s16, 8  ;;  %p2372_p11 = scmp.lt.s32.totalorder %s2365_s16, %s3138_s1 }
  0x53   : > { %p2367_p1 = scmp.ne.s32.totalorder %s2365_s16, %s2366_s24  ;;  %p2373_p6 = scmp.lt.s32.totalorder %s2371_s14, %s2366_s24 }
  0x55   : > { %p2369_p8 = pnand %p2367_p1, %p2248_p9  ;;  %p2374_p12 = por %p2373_p6, %p2372_p11 }
  0x57   : > { %p2370_p10 = pneg %p2369_p8 }
  0x59   : > { %p2375_p2 = pnand %p2374_p12, %p2370_p10 }
  0x5b   : > { %2378 = shalt.err (!%p2375_p2)
}
  0x5c   : > { %2031 = dma.hbm_to_vmem [thread:$0]  (!%p2700_p7), %s456_s4, 128, %s458_s13, %s446_s8, %s3190_s18, %s3190_s18, %s3189_s15  }
  0x5d   : > { %s494_s21 = scalar_lea.hbm %s3140_s3, %s2694_s25  ;;  %s490_s7 = scalar_lea.vmem [#allocation7], %s2691_s19 }
  0x5e   : > { %s498_s2 = sshll.u32 %s490_s7, 4  ;;  %s496_s16 = sshll.u32 %s494_s21, 4  ;;  %s499_s2 = int_to_ptr.vmem [resolvable:$true] %s498_s2  ;;  %s497_s16 = int_to_ptr.hbm [resolvable:$true] %s496_s16 }
  0x5f   : > { %s2394_s24 = sshra.s32 %s497_s16, 4  ;;  %s2401_s8 = scalar_lea.hbm %s3140_s3, 16  ;;  %s2395_s24 = int_to_ptr.hbm [resolvable:$true] %s2394_s24 }
  0x60   : > { %s2396_s30 = scalar_lea.hbm %s2395_s24, 8  ;;  %p2402_p10 = scmp.lt.s32.totalorder %s2395_s24, %s3140_s3 }
  0x61   : > { %p2397_p5 = scmp.ne.s32.totalorder %s2395_s24, %s2396_s30  ;;  %p2403_p11 = scmp.lt.s32.totalorder %s2401_s8, %s2396_s30 }
  0x63   : > { %p2399_p1 = pnand %p2397_p5, %p2248_p9  ;;  %p2404_p6 = por %p2403_p11, %p2402_p10 }
  0x65   : > { %p2400_p8 = pneg %p2399_p1 }
  0x67   : > { %p2405_p12 = pnand %p2404_p6, %p2400_p8 }
  0x69   : > { %2408 = shalt.err (!%p2405_p12)
}
  0x6a   : > { %2037 = dma.hbm_to_vmem [thread:$0]  (!%p2700_p7), %s497_s16, 128, %s499_s2, %s2710_s12  }
  0x6b   : > { %507 = sbr.rel (%p2626_p3) target bundleno = 3967 (0xf7f), region = 68  ;;  %s2792_s19 = sand.u32 (!%p2626_p3), 1, %s2498_s22  }
  0x6c   : > { %s2795_s25 = sshll.u32 (!%p2626_p3), %s2792_s19, 3  ;;  %s510_s4 = scalar_lea.sflag (!%p2626_p3), [#allocation3], %s2792_s19 }
  0x6d   : > { %s513_s13 = scalar_lea.vmem (!%p2626_p3), [#allocation2], %s2795_s25 }
  0x70   : > { %2469 = dma.done.wait (%p2675_p13), %s510_s4, 128  }
  0x71   : > { %2471 = vsyncadd (%p2675_p13), %s510_s4, 4294967168  ;;  %s519_s12 = sand.u32 1, %s2621_s28   ;;  %s523_s27 = scalar_lea.vmem [#allocation5], %s2795_s25 }
  0x72   : > { %s520_s29 = scalar_lea.sflag [#allocation6], %s519_s12 }
  0x73   : > { %2473 = dma.done.wait (%p2675_p13), %s520_s29, 256  }
  0x74   : > { %2475 = vsyncadd (%p2675_p13), %s520_s29, 4294967040  ;;  %s533_s26 = scalar_lea.vmem [#allocation7], %s2795_s25  ;;  %p3193_p3 = scmp.eq.s32.totalorder %s2621_s28, 0 }
  0x76   : > { %2477 = dma.done.wait (%p3193_p3), [#allocation9], 384   ;;  %p3194_p7 = pmov %p3193_p3 }
  0x77   : > { %p3195_p9 = pmov %p3193_p3 }
  0x78   : > { %2479 = vsyncadd (%p3194_p7), [#allocation9], 4294966912 }
  0x79   : > { %2481 = dma.done.wait (%p3195_p9), [#allocation12], 512   ;;  %p3196_p2 = pmov %p3193_p3 }
  0x7b   : > { %2483 = vsyncadd (%p3196_p2), [#allocation12], 4294966784  ;;  %p3197_p5 = pmov %p3196_p2 }
  0x7c   : > { %p3198_p1 = pmov %p3196_p2 }
  0x7d   : > { %2485 = dma.done.wait (%p3197_p5), [#allocation15], 512  }
  0x7e   : > { %2487 = vsyncadd (%p3198_p1), [#allocation15], 4294966784  ;;  %p619_p13 = scmp.lt.s32.totalorder %s2621_s28, 1  ;;  %vm628_vm0 = vcmask 261120   ;;  %v2516_v2 = vmov 32.0   ;;  %v2862_v26 = vld [vmem:[%s533_s26] sm:$0xff] }
  0x7f   : > { %2112 = vrcp.f32 %v2516_v2  ;;  %v1863_v14 = vld [vmem:[%s3142_s5 + $0x10] sm:$0xf]  ;;  %v1961_v15 = vld [vmem:[%s3142_s5 + $0x14] sm:$0xf0]  ;;  %v1960_v16 = vld [vmem:[%s3142_s5 + $0x14] sm:$0xf] }
  0x80   : > { %s620_s20 = scalar_select %p619_p13, %s2621_s28, 1  ;;  %v1864_v17 = vor.u32 %v1961_v15, %v1863_v14  ;;  %v1865_v18 = vld [vmem:[%s3142_s5 + $0x18] sm:$0xf0]  ;;  %v1855_v19 = vld [vmem:[%s3142_s5] sm:$0xf]  ;;  %vm864_vm5 = vcmask 1043456  }
  0x81   : > { %v1959_v20 = vld [vmem:[%s3142_s5 + $0x4] sm:$0xf0]  ;;  %v1868_v21 = vor.u32 %v1960_v16, %v1865_v18  ;;  %v1958_v22 = vld [vmem:[%s3142_s5 + $0x4] sm:$0xf]  ;;  %v1857_v23 = vld [vmem:[%s3142_s5 + $0x8] sm:$0xf0] }
  0x82   : > { %s1852_s6 = sshll.u32 %s620_s20, 3  ;;  %696 = vmatpush.bf16.msra.mxu0 %v1864_v17  ;;  %v1856_v24 = vor.u32 %v1959_v20, %v1855_v19  ;;  %v1860_v25 = vor.u32 %v1958_v22, %v1857_v23  ;;  %v2869_v30 = vld [vmem:[%s523_s27] sm:$0xff]  ;;  %s2518_s2 = smov 64   ;;  %vm828_vm6 = vcmask 64512   ;;  %vm1075_vm7 = vcmask 130048  }
  0x83   : > { %s622_s7 = scalar_lea.vmem %s3137_s0, %s1852_s6  ;;  %709 = vmatpush.bf16.msra.mxu1 %v1868_v21  ;;  %v2873_v36 = vld [vmem:[#allocation8] sm:$0x3f]  ;;  %s2519_s27 = smov 32   ;;  %vm1077_vm8 = vcmask 195584   ;;  %vm1608_vm15 = vcmask 523264  }
  0x84   : > { %v2827_v0 = vld [vmem:[%s622_s7] sm:$0xff]  ;;  %s2517_s7 = smov 96   ;;  %v658_v38 = vperm.slane %v2873_v36, 0  ;;  %v660_v41 = vperm.slane %v2873_v36, 1  ;;  %s2520_s26 = smov 104  }
  0x85   : > { %v629_v1 = vsel %vm628_vm0, %v2827_v0, 0.0  ;;  %v2113_v3 = vpop.eup %2112  ;;  %771 = vrot.lane.b32.xlu1 %v2862_v26, %s2517_s7  ;;  %s2521_s16 = smov 120   ;;  %s2522_s24 = smov 40  }
  0x86   : > { %630 = vadd.xlane.f32.xlu0 %v629_v1  ;;  %v633_v4 = vmul.f32 32.0, %v2113_v3  ;;  %vm637_vm1 = vweird.f32 %v2113_v3  ;;  %697 = vmatpush.bf16.msra.mxu0 %v1856_v24  ;;  %s2523_s30 = smov 56   ;;  %s2524_s14 = smov 112  }
  0x87   : > { %710 = vmatpush.bf16.msra.mxu1 %v1860_v25  ;;  %s2525_s17 = smov 48   ;;  %s2526_s8 = smov 72  }
  0x88   : > { %v634_v5 = vsub.f32 1.0, %v633_v4  ;;  %s2527_s15 = smov 8   ;;  %s2528_s18 = smov 80  }
  0x89   : > { %s2529_s4 = smov 24   ;;  %s2530_s12 = smov 16  }
  0x8a   : > { %v635_v6 = vmul.f32 %v2113_v3, %v634_v5  ;;  %s2531_s29 = smov 88  }
  0x8c   : > { %v636_v7 = vadd.f32 %v2113_v3, %v635_v6 }
  0x8d   : > { %767 = vrot.lane.b32.xlu1 %v2869_v30, %s2518_s2 }
  0x8e   : > { %v2831_v8 = vsel %vm637_vm1, %v2113_v3, %v636_v7 }
  0xf7   : > { %v772_v45 = vpop.permute.xlu1 %771 }
  0xf9   : > { %v631_v9 = vpop.xlane.xlu0 %630 }
  0xfa   : > { %v639_v10 = vmul.f32 %v2831_v8, %v631_v9 }
  0xfc   : > { %v640_v11 = vsub.f32 %v2827_v0, %v639_v10 }
  0xfe   : > { %v641_v12 = vmul.f32 %v640_v11, %v640_v11 }
  0xff   : > { %v768_v53 = vpop.permute.xlu1 %767 }
 0x100   : > { %v642_v13 = vsel %vm628_vm0, %v641_v12, 0.0 }
 0x101   : > { %643 = vadd.xlane.f32.xlu0 %v642_v13 }
 0x174   : > { %v644_v27 = vpop.xlane.xlu0 %643 }
 0x175   : > { %v645_v28 = vmul.f32 %v644_v27, %v2831_v8 }
 0x177   : > { %v646_v29 = vadd.f32 1e-06, %v645_v28 }
 0x179   : > { %2114 = vrsqrt.f32 %v646_v29  ;;  %vm653_vm3 = vweird.f32 %v646_v29 }
 0x17f   : > { %v2115_v31 = vpop.eup %2114 }
 0x180   : > { %v648_v32 = vmul.f32 %v2115_v31, %v646_v29  ;;  %vm654_vm2 = vweird.f32 %v2115_v31 }
 0x181   : > { %vm655_vm4 = vmor %vm653_vm3, %vm654_vm2 }
 0x182   : > { %v649_v33 = vmul.f32 %v2115_v31, %v648_v32 }
 0x184   : > { %v650_v34 = vmul.f32 0.5, %v649_v33 }
 0x186   : > { %v651_v35 = vsub.f32 1.5, %v650_v34 }
 0x188   : > { %v652_v37 = vmul.f32 %v2115_v31, %v651_v35 }
 0x18a   : > { %v656_v39 = vsel %vm655_vm4, %v2115_v31, %v652_v37 }
 0x18b   : > { %v657_v40 = vmul.f32 %v656_v39, %v640_v11 }
 0x18d   : > { %v659_v42 = vmul.f32 %v658_v38, %v657_v40 }
 0x18f   : > { %v661_v43 = vadd.f32 %v660_v41, %v659_v42 }
 0x191   : > { %v662_v44 = vpack.c.bf16 %v661_v43, %v661_v43 }
 0x193   : > { %1869 = vmatmul.msk.bf16.vlgmr.msra.gmra.mxu0 %vm628_vm0, %v662_v44  ;;  %1870 = vmatmul.msk.bf16.vlgmr.msra.gmra.mxu1 %vm628_vm0, %v662_v44 }
 0x210   : > { %v2879_v46 = vpop.f32.mrf.mxu0  ;;  %v712_v47 = vpop.f32.mrf.mxu1 }
 0x211   : > { %v2881_v48 = vpack.c.bf16 %v712_v47, %v712_v47  ;;  %v774_v49 = vmul.f32 %v772_v45, %v2879_v46  ;;  %v770_v54 = vmul.f32 %v768_v53, %v2879_v46  ;;  %v716_v1 = vmul.f32 %v2879_v46, %v2869_v30 }
 0x213   : > { %776 = vrot.lane.b32.xlu2 %v774_v49, %s2517_s7  ;;  %v866_v50 = vsel %vm864_vm5, %v2881_v48, 0 }
 0x214   : > { %875 = vmatpush.bf16.msra.mxu3 %v866_v50 }
 0x218   : > { %v701_v51 = vpop.f32.mrf.mxu0  ;;  %v714_v52 = vpop.f32.mrf.mxu1 }
 0x21b   : > { %718 = vrot.lane.b32.xlu2 %v2862_v26, %s2519_s27 }
 0x223   : > { %784 = vrot.lane.b32.xlu2 %v2862_v26, %s2520_s26 }
 0x26d   : > { %v777_v55 = vpop.permute.xlu2 %776 }
 0x26e   : > { %v779_v56 = vadd.f32 %v777_v55, %v770_v54 }
 0x270   : > { %v824_v57 = vpack.c.bf16 %v779_v56, %v779_v56 }
 0x272   : > { %826 = vrot.lane.b32.xlu0 %v824_v57, %s2518_s2 }
 0x275   : > { %v2892_v58 = vpop.permute.xlu2 %718 }
 0x276   : > { %v721_v59 = vmul.f32 %v2892_v58, %v2879_v46 }
 0x278   : > { %723 = vrot.lane.b32.xlu1 %v721_v59, %s2517_s7 }
 0x27a   : > { %810 = vrot.lane.b32.xlu0 %v2862_v26, %s2521_s16 }
 0x27d   : > { %v785_v60 = vpop.permute.xlu2 %784 }
 0x27e   : > { %v787_v61 = vmul.f32 %v785_v60, %v2879_v46 }
 0x280   : > { %732 = vrot.lane.b32.xlu1 %v2862_v26, %s2522_s24 }
 0x282   : > { %758 = vrot.lane.b32.xlu0 %v2862_v26, %s2523_s30 }
 0x288   : > { %797 = vrot.lane.b32.xlu1 %v2862_v26, %s2524_s14 }
 0x28a   : > { %789 = vrot.lane.b32.xlu0 %v787_v61, %s2517_s7 }
 0x290   : > { %745 = vrot.lane.b32.xlu1 %v2862_v26, %s2525_s17 }
 0x298   : > { %780 = vrot.lane.b32.xlu1 %v2869_v30, %s2526_s8 }
 0x2a0   : > { %728 = vrot.lane.b32.xlu1 %v2869_v30, %s2527_s15 }
 0x2a8   : > { %793 = vrot.lane.b32.xlu1 %v2869_v30, %s2528_s18 }
 0x2e4   : > { %v827_v62 = vpop.permute.xlu0 %826 }
 0x2e5   : > { %v833_v63 = vsel %vm828_vm6, %v827_v62, 0 }
 0x2e6   : > { %842 = vmatpush.bf16.xpose.msra.mxu2 %v833_v63 }
 0x2ea   : > { %v724_v2 = vpop.permute.xlu1 %723 }
 0x2eb   : > { %v726_v3 = vadd.f32 %v724_v2, %v716_v1 }
 0x2ec   : > { %v811_v4 = vpop.permute.xlu0 %810 }
 0x2ed   : > { %v823_v5 = vpack.c.bf16 %v726_v3, %v726_v3  ;;  %v813_v6 = vmul.f32 %v811_v4, %v2879_v46 }
 0x2ef   : > { %815 = vrot.lane.b32.xlu1 %v813_v6, %s2517_s7  ;;  %1871 = vmatmul.msk.bf16.vlgmr.msra.gmra.mxu2 %vm828_vm6, %v823_v5 }
 0x2f2   : > { %v2921_v7 = vpop.permute.xlu1 %732 }
 0x2f3   : > { %v735_v9 = vmul.f32 %v2921_v7, %v2879_v46 }
 0x2f4   : > { %v2932_v13 = vpop.permute.xlu0 %758 }
 0x2f5   : > { %737 = vrot.lane.b32.xlu0 %v735_v9, %s2517_s7  ;;  %v761_v39 = vmul.f32 %v2932_v13, %v2879_v46 }
 0x2f7   : > { %754 = vrot.lane.b32.xlu1 %v2869_v30, %s2529_s4 }
 0x2fa   : > { %v798_v10 = vpop.permute.xlu1 %797 }
 0x2fb   : > { %v800_v11 = vmul.f32 %v798_v10, %v2879_v46 }
 0x2fc   : > { %v790_v17 = vpop.permute.xlu0 %789 }
 0x2fd   : > { %802 = vrot.lane.b32.xlu0 %v800_v11, %s2517_s7 }
 0x302   : > { %v2930_v12 = vpop.permute.xlu1 %745 }
 0x303   : > { %v748_v15 = vmul.f32 %v2930_v12, %v2879_v46 }
 0x305   : > { %741 = vrot.lane.b32.xlu0 %v2869_v30, %s2530_s12 }
 0x30a   : > { %v781_v14 = vpop.permute.xlu1 %780 }
 0x30b   : > { %v783_v16 = vmul.f32 %v781_v14, %v2879_v46 }
 0x30d   : > { %750 = vrot.lane.b32.xlu0 %v748_v15, %s2517_s7  ;;  %v792_v18 = vadd.f32 %v790_v17, %v783_v16 }
 0x30f   : > { %v882_v19 = vpack.c.bf16 %v792_v18, %v792_v18 }
 0x312   : > { %v2941_v20 = vpop.permute.xlu1 %728 }
 0x313   : > { %v731_v40 = vmul.f32 %v2941_v20, %v2879_v46 }
 0x315   : > { %887 = vrot.lane.b32.xlu0 %v882_v19, %s2523_s30 }
 0x31a   : > { %v794_v22 = vpop.permute.xlu1 %793 }
 0x31b   : > { %v796_v23 = vmul.f32 %v794_v22, %v2879_v46 }
 0x361   : > { %v816_v49 = vpop.permute.xlu1 %815 }
 0x367   : > { %v738_v21 = vpop.permute.xlu0 %737 }
 0x368   : > { %v740_v41 = vadd.f32 %v738_v21, %v731_v40 }
 0x369   : > { %v2962_v55 = vpop.permute.xlu1 %754 }
 0x36a   : > { %v881_v42 = vpack.c.bf16 %v740_v41, %v740_v41  ;;  %v757_v59 = vmul.f32 %v2962_v55, %v2879_v46 }
 0x36f   : > { %v803_v24 = vpop.permute.xlu0 %802 }
 0x370   : > { %v805_v25 = vadd.f32 %v803_v24, %v796_v23 }
 0x372   : > { %v943_v26 = vpack.c.bf16 %v805_v25, %v805_v25  ;;  %v844_v27 = vpop.f32.mrf.mxu2 }
 0x373   : > { %v848_v28 = vsel %vm828_vm6, %v844_v27, -inf }
 0x374   : > { %948 = vrot.lane.b32.xlu0 %v943_v26, %s2525_s17  ;;  %849 = vmax.xlane.f32.xlu2 %v848_v28 }
 0x377   : > { %v2946_v29 = vpop.permute.xlu0 %741 }
 0x378   : > { %v744_v32 = vmul.f32 %v2946_v29, %v2879_v46 }
 0x37a   : > { %v846_v31 = vpop.f32.mrf.mxu2 }
 0x37f   : > { %v751_v33 = vpop.permute.xlu0 %750 }
 0x380   : > { %v753_v34 = vadd.f32 %v751_v33, %v744_v32 }
 0x382   : > { %v942_v35 = vpack.c.bf16 %v753_v34, %v753_v34 }
 0x384   : > { %945 = vrot.lane.b32.xlu0 %v942_v35, %s2524_s14 }
 0x387   : > { %v888_v37 = vpop.permute.xlu0 %887 }
 0x388   : > { %v893_v38 = vsel %vm828_vm6, %v888_v37, 0 }
 0x389   : > { %902 = vmatpush.bf16.xpose.msrb.mxu3 %v893_v38 }
 0x38c   : > { %806 = vrot.lane.b32.xlu2 %v2869_v30, %s2531_s29 }
 0x394   : > { %763 = vrot.lane.b32.xlu2 %v761_v39, %s2517_s7 }
 0x39c   : > { %884 = vrot.lane.b32.xlu2 %v881_v42, %s2521_s16 }
 0x3e6   : > { %v949_v43 = vpop.permute.xlu0 %948 }
 0x3e7   : > { %v850_v44 = vpop.xlane.xlu2 %849  ;;  %v954_v45 = vsel %vm828_vm6, %v949_v43, 0 }
 0x3e8   : > { %v851_v47 = vsub.f32 %v844_v27, %v850_v44  ;;  %963 = vmatpush.bf16.xpose.msrb.mxu1 %v954_v45 }
 0x3ea   : > { %v852_v50 = vmul.f32 1.442695, %v851_v47 }
 0x3ec   : > { %2116 = vpow2.f32 %v852_v50 }
 0x3ef   : > { %v807_v51 = vpop.permute.xlu2 %806 }
 0x3f0   : > { %v809_v52 = vmul.f32 %v807_v51, %v2879_v46 }
 0x3f2   : > { %v2117_v53 = vpop.eup %2116  ;;  %v818_v54 = vadd.f32 %v816_v49, %v809_v52 }
 0x3f3   : > { %v854_v56 = vsel %vm828_vm6, %v2117_v53, 0.0 }
 0x3f4   : > { %v1003_v57 = vpack.c.bf16 %v818_v54, %v818_v54  ;;  %855 = vadd.xlane.f32.xlu1 %v854_v56 }
 0x3f6   : > { %v946_v60 = vpop.permute.xlu0 %945  ;;  %1008 = vrot.lane.b32.xlu2 %v1003_v57, %s2522_s24 }
 0x3f7   : > { %1875 = vmatmul.msk.bf16.vlgmr.msrb.gmra.mxu1 %vm828_vm6, %v946_v60  ;;  %v764_v61 = vpop.permute.xlu2 %763 }
 0x3f8   : > { %v766_v62 = vadd.f32 %v764_v61, %v757_v59 }
 0x3fa   : > { %v1002_v63 = vpack.c.bf16 %v766_v62, %v766_v62 }
 0x3fe   : > { %1005 = vrot.lane.b32.xlu2 %v1002_v63, %s2520_s26 }
 0x3ff   : > { %v885_v2 = vpop.permute.xlu2 %884 }
 0x450   : > { %v1009_v5 = vpop.permute.xlu2 %1008 }
 0x451   : > { %v1014_v9 = vsel %vm828_vm6, %v1009_v5, 0 }
 0x458   : > { %v1006_v14 = vpop.permute.xlu2 %1005 }
 0x467   : > { %v856_v1 = vpop.xlane.xlu1 %855 }
 0x468   : > { %2118 = vrcp.f32 %v856_v1 }
 0x46e   : > { %v2119_v3 = vpop.eup %2118 }
 0x46f   : > { %v858_v4 = vmul.f32 %v2119_v3, %v2117_v53 }
 0x471   : > { %v859_v6 = vpack.c.bf16 %v858_v4, %v858_v4 }
 0x473   : > { %1872 = vmatmul.msk.bf16.vlgmr.msra.gmra.mxu3 %vm828_vm6, %v859_v6  ;;  %v1963_v6 = vld [vmem:[#allocation10 + $0x8] sm:$0xff] }
 0x474   : > { %1023 = vmatpush.bf16.xpose.msra.mxu3 %v1014_v9  ;;  %v965_v46 = vpop.f32.mrf.mxu1  ;;  %1101 = vmatpush.bf16.msra.mxu1 %v1963_v6  ;;  %v1962_v9 = vld [vmem:[#allocation10] sm:$0xff] }
 0x475   : > { %v969_v10 = vsel %vm828_vm6, %v965_v46, -inf }
 0x476   : > { %970 = vmax.xlane.f32.xlu2 %v969_v10 }
 0x478   : > { %1102 = vmatpush.bf16.msra.mxu1 %v1962_v9 }
 0x47c   : > { %v967_v11 = vpop.f32.mrf.mxu1 }
 0x483   : > { %1873 = vmatmul.msk.bf16.vlgmr.msrb.gmra.mxu3 %vm828_vm6, %v885_v2 }
 0x493   : > { %1877 = vmatmul.msk.bf16.vlgmr.msra.gmra.mxu3 %vm828_vm6, %v1006_v14 }
 0x4e9   : > { %v971_v16 = vpop.xlane.xlu2 %970 }
 0x4ea   : > { %v972_v17 = vsub.f32 %v965_v46, %v971_v16 }
 0x4ec   : > { %v973_v19 = vmul.f32 1.442695, %v972_v17 }
 0x4ee   : > { %2120 = vpow2.f32 %v973_v19 }
 0x4f4   : > { %v2121_v23 = vpop.eup %2120 }
 0x4f5   : > { %v975_v25 = vsel %vm828_vm6, %v2121_v23, 0.0 }
 0x4f6   : > { %v2975_v15 = vpop.f32.mrf.mxu3 }
 0x4fe   : > { %v879_v18 = vpop.f32.mrf.mxu3 }
 0x506   : > { %v904_v21 = vpop.f32.mrf.mxu3 }
 0x507   : > { %v908_v22 = vsel %vm828_vm6, %v904_v21, -inf }
 0x508   : > { %909 = vmax.xlane.f32.xlu0 %v908_v22 }
 0x50e   : > { %v906_v24 = vpop.f32.mrf.mxu3 }
 0x510   : > { %976 = vadd.xlane.f32.xlu0 %v975_v25 }
 0x516   : > { %v1025_v26 = vpop.f32.mrf.mxu3 }
 0x517   : > { %v1029_v27 = vsel %vm828_vm6, %v1025_v26, -inf }
 0x518   : > { %1030 = vmax.xlane.f32.xlu1 %v1029_v27 }
 0x51e   : > { %v1027_v28 = vpop.f32.mrf.mxu3 }
 0x51f   : > { %v1965_v28 = vld [vmem:[#allocation11 + $0x8] sm:$0xff] }
 0x524   : > { %981 = vrot.lane.b32.xlu0 %v2881_v48, %s2524_s14 }
 0x57b   : > { %v910_v31 = vpop.xlane.xlu0 %909 }
 0x57c   : > { %v911_v32 = vsub.f32 %v904_v21, %v910_v31  ;;  %v1964_v31 = vld [vmem:[#allocation11] sm:$0xff] }
 0x57e   : > { %v912_v33 = vmul.f32 1.442695, %v911_v32 }
 0x580   : > { %2122 = vpow2.f32 %v912_v33 }
 0x583   : > { %v977_v37 = vpop.xlane.xlu0 %976 }
 0x584   : > { %2124 = vrcp.f32 %v977_v37  ;;  %v1966_v37 = vld [vmem:[%s513_s13] sm:$0xff] }
 0x586   : > { %v2123_v34 = vpop.eup %2122 }
 0x587   : > { %v914_v35 = vsel %vm828_vm6, %v2123_v34, 0.0 }
 0x588   : > { %915 = vadd.xlane.f32.xlu1 %v914_v35 }
 0x58a   : > { %v2125_v41 = vpop.eup %2124 }
 0x58b   : > { %v1031_v38 = vpop.xlane.xlu1 %1030  ;;  %v979_v42 = vmul.f32 %v2125_v41, %v2121_v23 }
 0x58c   : > { %v1032_v39 = vsub.f32 %v1025_v26, %v1031_v38 }
 0x58d   : > { %v980_v49 = vpack.c.bf16 %v979_v42, %v979_v42 }
 0x58e   : > { %v1033_v40 = vmul.f32 1.442695, %v1032_v39 }
 0x590   : > { %2126 = vpow2.f32 %v1033_v40 }
 0x596   : > { %v2127_v43 = vpop.eup %2126  ;;  %v982_v44 = vpop.permute.xlu0 %981 }
 0x597   : > { %v1035_v45 = vsel %vm828_vm6, %v2127_v43, 0.0  ;;  %v987_v47 = vsel %vm864_vm5, %v982_v44, 0  ;;  %v1131_v44 = vperm.slane %v2873_v36, 2 }
 0x598   : > { %1036 = vadd.xlane.f32.xlu2 %v1035_v45  ;;  %996 = vmatpush.bf16.msrb.mxu2 %v987_v47 }
 0x59b   : > { %1876 = vmatmul.msk.bf16.vlgmr.msrb.gmra.mxu2 %vm828_vm6, %v980_v49  ;;  %v1133_v49 = vperm.slane %v2873_v36, 3 }
 0x59c   : > { %1161 = vmatpush.bf16.msra.mxu2 %v1965_v28 }
 0x5a0   : > { %1162 = vmatpush.bf16.msra.mxu2 %v1964_v31 }
 0x5a1   : > { %921 = vrot.lane.b32.xlu1 %v2881_v48, %s2521_s16 }
 0x5b0   : > { %1041 = vrot.lane.b32.xlu2 %v2881_v48, %s2520_s26 }
 0x5fb   : > { %v916_v50 = vpop.xlane.xlu1 %915 }
 0x5fc   : > { %2128 = vrcp.f32 %v916_v50 }
 0x602   : > { %v2129_v52 = vpop.eup %2128 }
 0x603   : > { %v918_v53 = vmul.f32 %v2129_v52, %v2123_v34  ;;  %v1967_v34 = vld [vmem:[#allocation13] sm:$0xff] }
 0x605   : > { %v919_v60 = vpack.c.bf16 %v918_v53, %v918_v53 }
 0x60b   : > { %v1037_v51 = vpop.xlane.xlu2 %1036 }
 0x60c   : > { %2130 = vrcp.f32 %v1037_v51 }
 0x612   : > { %v2131_v62 = vpop.eup %2130 }
 0x613   : > { %v922_v54 = vpop.permute.xlu1 %921  ;;  %v1042_v56 = vpop.permute.xlu2 %1041  ;;  %v1039_v48 = vmul.f32 %v2131_v62, %v2127_v43 }
 0x614   : > { %v1047_v57 = vsel %vm864_vm5, %v1042_v56, 0  ;;  %v927_v59 = vsel %vm864_vm5, %v922_v54, 0 }
 0x615   : > { %936 = vmatpush.bf16.msrb.mxu0 %v927_v59  ;;  %v1040_v63 = vpack.c.bf16 %v1039_v48, %v1039_v48 }
 0x618   : > { %1874 = vmatmul.msk.bf16.vlgmr.msrb.gmra.mxu0 %vm828_vm6, %v919_v60 }
 0x619   : > { %1056 = vmatpush.bf16.msra.mxu0 %v1047_v57 }
 0x61e   : > { %v998_v61 = vpop.f32.mrf.mxu2 }
 0x626   : > { %v1000_v1 = vpop.f32.mrf.mxu2 }
 0x628   : > { %1878 = vmatmul.msk.bf16.vlgmr.msra.gmra.mxu0 %vm828_vm6, %v1040_v63 }
 0x695   : > { %v938_v2 = vpop.f32.mrf.mxu0 }
 0x696   : > { %1063 = vrot.lane.b32.xlu1 %v938_v2, %s2527_s15 }
 0x69d   : > { %v940_v3 = vpop.f32.mrf.mxu0 }
 0x69e   : > { %1067 = vrot.lane.b32.xlu1 %v998_v61, %s2530_s12 }
 0x6a5   : > { %v1058_v4 = vpop.f32.mrf.mxu0 }
 0x6a6   : > { %1071 = vrot.lane.b32.xlu0 %v1058_v4, %s2529_s4 }
 0x6ad   : > { %v1060_v5 = vpop.f32.mrf.mxu0 }
 0x708   : > { %v1064_v46 = vpop.permute.xlu1 %1063 }
 0x709   : > { %v1074_v11 = vsel %vm828_vm6, %v2975_v15, %v1064_v46 }
 0x710   : > { %v1068_v10 = vpop.permute.xlu1 %1067 }
 0x711   : > { %v1076_v14 = vsel %vm1075_vm7, %v1074_v11, %v1068_v10 }
 0x718   : > { %v1072_v16 = vpop.permute.xlu0 %1071 }
 0x719   : > { %v1078_v17 = vsel %vm1077_vm8, %v1076_v14, %v1072_v16 }
 0x71a   : > { %v1079_v18 = vpack.c.bf16 %v1078_v17, %v1078_v17 }
 0x71c   : > { %1887 = vmatmul.msk.bf16.vlgmr.msra.gmra.mxu1 %vm628_vm0, %v1079_v18 }
 0x799   : > { %v1104_v19 = vpop.f32.mrf.mxu1 }
 0x79a   : > { %v3003_v21 = vadd.f32 %v1104_v19, %v2827_v0  ;;  %v1968_v0 = vld [vmem:[#allocation13 + $0x8] sm:$0xff] }
 0x79b   : > { %1200 = vmatpush.bf16.msrb.mxu3 %v1968_v0 }
 0x79c   : > { %v1109_v22 = vsel %vm628_vm0, %v3003_v21, 0.0 }
 0x79d   : > { %1110 = vadd.xlane.f32.xlu1 %v1109_v22 }
 0x79f   : > { %1201 = vmatpush.bf16.msrb.mxu3 %v1967_v34 }
 0x7a1   : > { %v1106_v23 = vpop.f32.mrf.mxu1 }
 0x7a2   : > { %1909 = vmatmul.msk.bf16.vlgmr.msrb.gmra.mxu3 %vm628_vm0, %v1966_v37 }
 0x810   : > { %v1111_v24 = vpop.xlane.xlu1 %1110 }
 0x811   : > { %v1112_v15 = vmul.f32 %v1111_v24, %v2831_v8 }
 0x813   : > { %v1113_v25 = vsub.f32 %v3003_v21, %v1112_v15 }
 0x815   : > { %v1114_v26 = vmul.f32 %v1113_v25, %v1113_v25 }
 0x817   : > { %v1115_v27 = vsel %vm628_vm0, %v1114_v26, 0.0 }
 0x818   : > { %1116 = vadd.xlane.f32.xlu0 %v1115_v27 }
 0x825   : > { %v1203_v53 = vpop.f32.mrf.mxu3 }
 0x82d   : > { %v1205_v54 = vpop.f32.mrf.mxu3 }
 0x82e   : > { %v3017_v56 = vpack.c.bf16 %v1205_v54, %v1203_v53 }
 0x830   : > { %v1246_v57 = vsel %vm828_vm6, %v3017_v56, 0 }
 0x831   : > { %1255 = vmatpush.bf16.xpose.msrb.mxu0 %v1246_v57 }
 0x88b   : > { %v1117_v32 = vpop.xlane.xlu0 %1116 }
 0x88c   : > { %v1118_v33 = vmul.f32 %v1117_v32, %v2831_v8 }
 0x88e   : > { %v1119_v35 = vadd.f32 1e-06, %v1118_v33 }
 0x890   : > { %2132 = vrsqrt.f32 %v1119_v35  ;;  %vm1126_vm10 = vweird.f32 %v1119_v35 }
 0x896   : > { %v2133_v38 = vpop.eup %2132 }
 0x897   : > { %v1121_v39 = vmul.f32 %v2133_v38, %v1119_v35  ;;  %vm1127_vm9 = vweird.f32 %v2133_v38 }
 0x898   : > { %vm1128_vm11 = vmor %vm1126_vm10, %vm1127_vm9 }
 0x899   : > { %v1122_v40 = vmul.f32 %v2133_v38, %v1121_v39 }
 0x89b   : > { %v1123_v41 = vmul.f32 0.5, %v1122_v40 }
 0x89d   : > { %v1124_v42 = vsub.f32 1.5, %v1123_v41 }
 0x89f   : > { %v1125_v43 = vmul.f32 %v2133_v38, %v1124_v42 }
 0x8a1   : > { %v1129_v45 = vsel %vm1128_vm11, %v2133_v38, %v1125_v43 }
 0x8a2   : > { %v1130_v47 = vmul.f32 %v1129_v45, %v1113_v25 }
 0x8a4   : > { %v1132_v50 = vmul.f32 %v1131_v44, %v1130_v47 }
 0x8a6   : > { %v1134_v51 = vadd.f32 %v1133_v49, %v1132_v50 }
 0x8a8   : > { %v1135_v52 = vpack.c.bf16 %v1134_v51, %v1134_v51 }
 0x8aa   : > { %1896 = vmatmul.msk.bf16.vlgmr.msra.gmra.mxu2 %vm628_vm0, %v1135_v52 }
 0x92d   : > { %v1164_v59 = vpop.f32.mrf.mxu2 }
 0x92e   : > { %v1216_v60 = vmul.f32 %v1164_v59, %v2921_v7  ;;  %v1209_v61 = vmul.f32 %v1164_v59, %v2892_v58  ;;  %v1230_v48 = vmul.f32 %v1164_v59, %v2932_v13  ;;  %v1223_v63 = vmul.f32 %v1164_v59, %v2930_v12 }
 0x92f   : > { %v1215_v7 = vmul.f32 %v1164_v59, %v2941_v20  ;;  %v1229_v3 = vmul.f32 %v1164_v59, %v2962_v55  ;;  %v1222_v6 = vmul.f32 %v1164_v59, %v2946_v29  ;;  %v1208_v9 = vmul.f32 %v1164_v59, %v2869_v30 }
 0x930   : > { %1218 = vrot.lane.b32.xlu2 %v1216_v60, %s2517_s7  ;;  %1211 = vrot.lane.b32.xlu1 %v1209_v61, %s2517_s7 }
 0x935   : > { %v1166_v62 = vpop.f32.mrf.mxu2 }
 0x938   : > { %1232 = vrot.lane.b32.xlu2 %v1230_v48, %s2517_s7 }
 0x940   : > { %1225 = vrot.lane.b32.xlu2 %v1223_v63, %s2517_s7 }
 0x948   : > { %1297 = vrot.lane.b32.xlu2 %v3017_v56, %s2521_s16 }
 0x98a   : > { %v1219_v1 = vpop.permute.xlu2 %1218 }
 0x98b   : > { %v1221_v58 = vadd.f32 %v1219_v1, %v1215_v7 }
 0x98d   : > { %v1293_v2 = vpack.c.bf16 %v1221_v58, %v1221_v58 }
 0x98f   : > { %1295 = vrot.lane.b32.xlu2 %v1293_v2, %s2521_s16  ;;  %s1954_s16 = sshll.u32 %s2621_s28, 3 }
 0x992   : > { %v1233_v4 = vpop.permute.xlu2 %1232 }
 0x993   : > { %v1235_v13 = vadd.f32 %v1233_v4, %v1229_v3 }
 0x995   : > { %v1405_v5 = vpack.c.bf16 %v1235_v13, %v1235_v13 }
 0x997   : > { %1407 = vrot.lane.b32.xlu0 %v1405_v5, %s2520_s26  ;;  %1409 = vrot.lane.b32.xlu2 %v3017_v56, %s2520_s26 }
 0x99a   : > { %v1226_v12 = vpop.permute.xlu2 %1225 }
 0x99b   : > { %v1228_v20 = vadd.f32 %v1226_v12, %v1222_v6 }
 0x99d   : > { %v1349_v14 = vpack.c.bf16 %v1228_v20, %v1228_v20 }
 0x99f   : > { %1353 = vrot.lane.b32.xlu2 %v3017_v56, %s2524_s14 }
 0x9a2   : > { %v1212_v46 = vpop.permute.xlu1 %1211  ;;  %v1298_v10 = vpop.permute.xlu2 %1297 }
 0x9a3   : > { %v1214_v55 = vadd.f32 %v1212_v46, %v1208_v9  ;;  %v1303_v11 = vsel %vm828_vm6, %v1298_v10, 0 }
 0x9a4   : > { %1312 = vmatpush.bf16.xpose.msrb.mxu2 %v1303_v11 }
 0x9a5   : > { %v1240_v16 = vpack.c.bf16 %v1214_v55, %v1214_v55 }
 0x9a7   : > { %1351 = vrot.lane.b32.xlu2 %v1349_v14, %s2524_s14  ;;  %1910 = vmatmul.msk.bf16.vlgmr.msrb.gmra.mxu0 %vm828_vm6, %v1240_v16  ;;  %s3200_s14 = sld [smem:[#allocation36_spill]] }
 0x9ad   : > { %s1638_s17 = scalar_lea.hbm %s3200_s14, %s1954_s16 }
 0x9e9   : > { %v1296_v17 = vpop.permute.xlu2 %1295 }
 0x9ea   : > { %1912 = vmatmul.msk.bf16.vlgmr.msrb.gmra.mxu2 %vm828_vm6, %v1296_v17 }
 0x9f1   : > { %v1410_v29 = vpop.permute.xlu2 %1409 }
 0x9f2   : > { %v1415_v18 = vsel %vm828_vm6, %v1410_v29, 0 }
 0x9f3   : > { %1424 = vmatpush.bf16.xpose.msra.mxu2 %v1415_v18 }
 0x9f9   : > { %v1354_v30 = vpop.permute.xlu2 %1353 }
 0x9fa   : > { %v1359_v19 = vsel %vm828_vm6, %v1354_v30, 0 }
 0x9fb   : > { %1368 = vmatpush.bf16.xpose.msra.mxu0 %v1359_v19 }
 0xa01   : > { %v1352_v22 = vpop.permute.xlu2 %1351 }
 0xa02   : > { %1914 = vmatmul.msk.bf16.vlgmr.msra.gmra.mxu0 %vm828_vm6, %v1352_v22 }
 0xa09   : > { %v1408_v23 = vpop.permute.xlu0 %1407 }
 0xa0a   : > { %1916 = vmatmul.msk.bf16.vlgmr.msra.gmra.mxu2 %vm828_vm6, %v1408_v23  ;;  %v1970_v23 = vld [vmem:[#allocation14 + $0x8] sm:$0xff] }
 0xa0b   : > { %1498 = vmatpush.bf16.msrb.mxu0 %v1970_v23 }
 0xa24   : > { %v1257_v24 = vpop.f32.mrf.mxu0 }
 0xa25   : > { %v1261_v15 = vsel %vm1075_vm7, %v1257_v24, -inf }
 0xa26   : > { %1262 = vmax.xlane.f32.xlu0 %v1261_v15 }
 0xa2c   : > { %v1259_v25 = vpop.f32.mrf.mxu0 }
 0xa3a   : > { %1274 = vrot.lane.b32.xlu0 %v3017_v56, %s2517_s7 }
 0xa6d   : > { %v1314_v26 = vpop.f32.mrf.mxu2 }
 0xa6e   : > { %v1318_v27 = vsel %vm1075_vm7, %v1314_v26, -inf }
 0xa6f   : > { %1319 = vmax.xlane.f32.xlu1 %v1318_v27 }
 0xa75   : > { %v1316_v28 = vpop.f32.mrf.mxu2 }
 0xa7f   : > { %v1370_v31 = vpop.f32.mrf.mxu0 }
 0xa80   : > { %v1374_v0 = vsel %vm1075_vm7, %v1370_v31, -inf }
 0xa81   : > { %1375 = vmax.xlane.f32.xlu1 %v1374_v0 }
 0xa87   : > { %v1372_v32 = vpop.f32.mrf.mxu0 }
 0xa8d   : > { %v1426_v33 = vpop.f32.mrf.mxu2 }
 0xa8e   : > { %v1430_v34 = vsel %vm1075_vm7, %v1426_v33, -inf }
 0xa8f   : > { %1431 = vmax.xlane.f32.xlu2 %v1430_v34 }
 0xa95   : > { %v1428_v35 = vpop.f32.mrf.mxu2 }
 0xa99   : > { %v1263_v37 = vpop.xlane.xlu0 %1262 }
 0xa9a   : > { %v1264_v38 = vsub.f32 %v1257_v24, %v1263_v37  ;;  %1330 = vrot.lane.b32.xlu1 %v3017_v56, %s2531_s29  ;;  %v1969_v24 = vld [vmem:[#allocation14] sm:$0xff] }
 0xa9b   : > { %1499 = vmatpush.bf16.msrb.mxu0 %v1969_v24 }
 0xa9c   : > { %v1265_v39 = vmul.f32 1.442695, %v1264_v38 }
 0xa9e   : > { %2134 = vpow2.f32 %v1265_v39 }
 0xaa4   : > { %v2135_v40 = vpop.eup %2134 }
 0xaa5   : > { %v1267_v41 = vsel %vm1075_vm7, %v2135_v40, 0.0 }
 0xaa6   : > { %1268 = vadd.xlane.f32.xlu2 %v1267_v41 }
 0xaac   : > { %v1275_v42 = vpop.permute.xlu0 %1274 }
 0xaad   : > { %1287 = vmatpush.bf16.msrb.mxu1 %v1275_v42  ;;  %v1972_v42 = vld [vmem:[#allocation16 + $0x8] sm:$0xff] }
 0xae2   : > { %v1320_v43 = vpop.xlane.xlu1 %1319 }
 0xae3   : > { %v1321_v44 = vsub.f32 %v1314_v26, %v1320_v43  ;;  %v1971_v43 = vld [vmem:[#allocation16] sm:$0xff] }
 0xae5   : > { %v1322_v45 = vmul.f32 1.442695, %v1321_v44 }
 0xae7   : > { %2136 = vpow2.f32 %v1322_v45 }
 0xaed   : > { %v2137_v47 = vpop.eup %2136 }
 0xaee   : > { %v1324_v49 = vsel %vm1075_vm7, %v2137_v47, 0.0 }
 0xaef   : > { %1325 = vadd.xlane.f32.xlu0 %v1324_v49 }
 0xaf4   : > { %v1376_v50 = vpop.xlane.xlu1 %1375 }
 0xaf5   : > { %v1377_v51 = vsub.f32 %v1370_v31, %v1376_v50 }
 0xaf7   : > { %v1378_v52 = vmul.f32 1.442695, %v1377_v51 }
 0xaf9   : > { %2138 = vpow2.f32 %v1378_v52 }
 0xaff   : > { %v2139_v53 = vpop.eup %2138 }
 0xb00   : > { %v1380_v54 = vsel %vm1075_vm7, %v2139_v53, 0.0 }
 0xb01   : > { %1381 = vadd.xlane.f32.xlu2 %v1380_v54  ;;  %v1528_v54 = vperm.slane %v2873_v36, 4 }
 0xb02   : > { %v1432_v57 = vpop.xlane.xlu2 %1431 }
 0xb03   : > { %v1433_v59 = vsub.f32 %v1426_v33, %v1432_v57  ;;  %1386 = vrot.lane.b32.xlu0 %v3017_v56, %s2528_s18  ;;  %s1642_s18 = sshll.u32 %s1638_s17, 4  ;;  %s1643_s18 = int_to_ptr.hbm [resolvable:$true] %s1642_s18 }
 0xb05   : > { %v1434_v60 = vmul.f32 1.442695, %v1433_v59 }
 0xb07   : > { %2140 = vpow2.f32 %v1434_v60  ;;  %v1530_v60 = vperm.slane %v2873_v36, 5 }
 0xb0c   : > { %v1331_v61 = vpop.permute.xlu1 %1330 }
 0xb0d   : > { %v2141_v62 = vpop.eup %2140  ;;  %1343 = vmatpush.bf16.msra.mxu3 %v1331_v61 }
 0xb0e   : > { %v1436_v48 = vsel %vm1075_vm7, %v2141_v62, 0.0 }
 0xb0f   : > { %1437 = vadd.xlane.f32.xlu2 %v1436_v48  ;;  %v1976_v48 = vld [vmem:[%s3148_s11 + $0x18] sm:$0xff] }
 0xb10   : > { %1616 = vmatpush.bf16.msrb.mxu2 %v1976_v48 }
 0xb19   : > { %v1269_v63 = vpop.xlane.xlu2 %1268 }
 0xb1a   : > { %2142 = vrcp.f32 %v1269_v63  ;;  %v1975_v63 = vld [vmem:[%s3148_s11 + $0x10] sm:$0xff] }
 0xb1b   : > { %1617 = vmatpush.bf16.msrb.mxu2 %v1975_v63 }
 0xb20   : > { %v2143_v7 = vpop.eup %2142 }
 0xb21   : > { %v1271_v1 = vmul.f32 %v2143_v7, %v2135_v40  ;;  %v1974_v7 = vld [vmem:[%s3148_s11 + $0x8] sm:$0xff] }
 0xb22   : > { %1618 = vmatpush.bf16.msrb.mxu2 %v1974_v7 }
 0xb23   : > { %v1272_v58 = vpack.c.bf16 %v1271_v1, %v1271_v1 }
 0xb25   : > { %1911 = vmatmul.msk.bf16.vlgmr.msrb.gmra.mxu1 %vm1075_vm7, %v1272_v58  ;;  %v1973_v58 = vld [vmem:[%s3148_s11] sm:$0xff] }
 0xb26   : > { %1619 = vmatpush.bf16.msrb.mxu2 %v1973_v58 }
 0xb27   : > { %1442 = vrot.lane.b32.xlu2 %v3017_v56, %s2526_s8  ;;  %s618_s8 = scalar_lea.vmem [#allocation17], %s2795_s25  ;;  %s2444_s25 = scalar_lea.hbm %s3200_s14, 16 }
 0xb62   : > { %v1326_v2 = vpop.xlane.xlu0 %1325 }
 0xb63   : > { %2144 = vrcp.f32 %v1326_v2 }
 0xb69   : > { %v2145_v3 = vpop.eup %2144 }
 0xb6a   : > { %v1328_v4 = vmul.f32 %v2145_v3, %v2137_v47 }
 0xb6c   : > { %v1329_v13 = vpack.c.bf16 %v1328_v4, %v1328_v4 }
 0xb6e   : > { %1913 = vmatmul.msk.bf16.vlgmr.msra.gmra.mxu3 %vm1075_vm7, %v1329_v13 }
 0xb74   : > { %v1382_v5 = vpop.xlane.xlu2 %1381 }
 0xb75   : > { %2146 = vrcp.f32 %v1382_v5  ;;  %v1387_v12 = vpop.permute.xlu0 %1386 }
 0xb76   : > { %1399 = vmatpush.bf16.msra.mxu1 %v1387_v12 }
 0xb7a   : > { %1558 = vmatpush.bf16.msrb.mxu1 %v1972_v42 }
 0xb7b   : > { %v2147_v6 = vpop.eup %2146 }
 0xb7c   : > { %v1384_v20 = vmul.f32 %v2147_v6, %v2139_v53 }
 0xb7e   : > { %v1385_v9 = vpack.c.bf16 %v1384_v20, %v1384_v20  ;;  %1559 = vmatpush.bf16.msrb.mxu1 %v1971_v43 }
 0xb80   : > { %1915 = vmatmul.msk.bf16.vlgmr.msra.gmra.mxu1 %vm1075_vm7, %v1385_v9 }
 0xb82   : > { %v1438_v46 = vpop.xlane.xlu2 %1437 }
 0xb83   : > { %2148 = vrcp.f32 %v1438_v46 }
 0xb89   : > { %v2149_v10 = vpop.eup %2148 }
 0xb8a   : > { %v1440_v56 = vmul.f32 %v2149_v10, %v2141_v62  ;;  %v1443_v55 = vpop.permute.xlu2 %1442 }
 0xb8b   : > { %1455 = vmatpush.bf16.msrb.mxu3 %v1443_v55 }
 0xb8c   : > { %v1441_v11 = vpack.c.bf16 %v1440_v56, %v1440_v56 }
 0xb8e   : > { %1917 = vmatmul.msk.bf16.vlgmr.msrb.gmra.mxu3 %vm1075_vm7, %v1441_v11 }
 0xba2   : > { %v1289_v14 = vpop.f32.mrf.mxu1 }
 0xbaa   : > { %v1291_v16 = vpop.f32.mrf.mxu1 }
 0xbf1   : > { %v1345_v17 = vpop.f32.mrf.mxu3 }
 0xbf2   : > { %1462 = vrot.lane.b32.xlu1 %v1345_v17, %s2527_s15  ;;  %s1640_s15 = sshll.u32 %s618_s8, 4  ;;  %s1641_s15 = int_to_ptr.vmem [resolvable:$true] %s1640_s15 }
 0xbf9   : > { %v1347_v29 = vpop.f32.mrf.mxu3 }
 0xbfd   : > { %v1401_v18 = vpop.f32.mrf.mxu1 }
 0xbfe   : > { %1466 = vrot.lane.b32.xlu0 %v1401_v18, %s2530_s12  ;;  %s2438_s12 = sshra.s32 %s1643_s18, 4  ;;  %s2439_s12 = int_to_ptr.hbm [resolvable:$true] %s2438_s12 }
 0xbff   : > { %s2440_s29 = scalar_lea.hbm %s2439_s12, 8  ;;  %p2445_p6 = scmp.lt.s32.totalorder %s2439_s12, %s3200_s14 }
 0xc00   : > { %p2441_p8 = scmp.ne.s32.totalorder %s2439_s12, %s2440_s29  ;;  %p2446_p12 = scmp.lt.s32.totalorder %s2444_s25, %s2440_s29 }
 0xc02   : > { %p2442_p10 = pnand %p2441_p8, %p2679_p0  ;;  %p2447_p3 = por %p2446_p12, %p2445_p6 }
 0xc04   : > { %p2443_p11 = pneg %p2442_p10 }
 0xc05   : > { %v1403_v30 = vpop.f32.mrf.mxu1 }
 0xc06   : > { %p2448_p7 = pnand %p2447_p3, %p2443_p11 }
 0xc11   : > { %v1457_v19 = vpop.f32.mrf.mxu3 }
 0xc12   : > { %1470 = vrot.lane.b32.xlu1 %v1457_v19, %s2529_s4  ;;  %s1628_s4 = scalar_lea.sflag [#allocation4], %s2792_s19 }
 0xc19   : > { %v1459_v22 = vpop.f32.mrf.mxu3 }
 0xc64   : > { %v1463_v15 = vpop.permute.xlu1 %1462 }
 0xc65   : > { %v1473_v26 = vsel %vm828_vm6, %v1289_v14, %v1463_v15 }
 0xc70   : > { %v1467_v25 = vpop.permute.xlu0 %1466 }
 0xc71   : > { %v1474_v27 = vsel %vm1075_vm7, %v1473_v26, %v1467_v25 }
 0xc84   : > { %v1471_v28 = vpop.permute.xlu1 %1470 }
 0xc85   : > { %v1475_v31 = vsel %vm1077_vm8, %v1474_v27, %v1471_v28 }
 0xc86   : > { %v1476_v0 = vpack.c.bf16 %v1475_v31, %v1475_v31 }
 0xc88   : > { %1926 = vmatmul.msk.bf16.vlgmr.msrb.gmra.mxu0 %vm628_vm0, %v1476_v0 }
 0xd05   : > { %v1501_v32 = vpop.f32.mrf.mxu0 }
 0xd06   : > { %v3077_v33 = vadd.f32 %v1501_v32, %v3003_v21 }
 0xd08   : > { %v1506_v34 = vsel %vm628_vm0, %v3077_v33, 0.0 }
 0xd09   : > { %1507 = vadd.xlane.f32.xlu0 %v1506_v34 }
 0xd0d   : > { %v1503_v35 = vpop.f32.mrf.mxu0 }
 0xd7c   : > { %v1508_v37 = vpop.xlane.xlu0 %1507 }
 0xd7d   : > { %v1509_v38 = vmul.f32 %v1508_v37, %v2831_v8 }
 0xd7f   : > { %v1510_v39 = vsub.f32 %v3077_v33, %v1509_v38 }
 0xd81   : > { %v1511_v40 = vmul.f32 %v1510_v39, %v1510_v39 }
 0xd83   : > { %v1512_v41 = vsel %vm628_vm0, %v1511_v40, 0.0 }
 0xd84   : > { %1513 = vadd.xlane.f32.xlu1 %v1512_v41 }
 0xdf7   : > { %v1514_v21 = vpop.xlane.xlu1 %1513 }
 0xdf8   : > { %v1515_v44 = vmul.f32 %v1514_v21, %v2831_v8 }
 0xdfa   : > { %v1516_v45 = vadd.f32 1e-06, %v1515_v44 }
 0xdfc   : > { %2150 = vrsqrt.f32 %v1516_v45  ;;  %vm1523_vm13 = vweird.f32 %v1516_v45 }
 0xe02   : > { %v2151_v47 = vpop.eup %2150 }
 0xe03   : > { %v1518_v49 = vmul.f32 %v2151_v47, %v1516_v45  ;;  %vm1524_vm12 = vweird.f32 %v2151_v47 }
 0xe04   : > { %vm1525_vm14 = vmor %vm1523_vm13, %vm1524_vm12 }
 0xe05   : > { %v1519_v50 = vmul.f32 %v2151_v47, %v1518_v49 }
 0xe07   : > { %v1520_v51 = vmul.f32 0.5, %v1519_v50 }
 0xe09   : > { %v1521_v52 = vsub.f32 1.5, %v1520_v51 }
 0xe0b   : > { %v1522_v53 = vmul.f32 %v2151_v47, %v1521_v52 }
 0xe0d   : > { %v1526_v57 = vsel %vm1525_vm14, %v2151_v47, %v1522_v53 }
 0xe0e   : > { %v1527_v59 = vmul.f32 %v1526_v57, %v1510_v39 }
 0xe10   : > { %v1529_v61 = vmul.f32 %v1528_v54, %v1527_v59 }
 0xe12   : > { %v1531_v62 = vadd.f32 %v1530_v60, %v1529_v61 }
 0xe14   : > { %v1532_v8 = vpack.c.bf16 %v1531_v62, %v1531_v62 }
 0xe16   : > { %1935 = vmatmul.msk.bf16.vlgmr.msrb.gmra.mxu1 %vm628_vm0, %v1532_v8 }
 0xe93   : > { %v1561_v36 = vpop.f32.mrf.mxu1 }
 0xe94   : > { %1571 = vrot.lane.b32.xlu2 %v1561_v36, %s2518_s2  ;;  %v1565_v2 = vmul.f32 0.5, %v1561_v36 }
 0xe96   : > { %2152 = vtanh.f32 %v1565_v2 }
 0xe9b   : > { %v1563_v1 = vpop.f32.mrf.mxu1 }
 0xe9c   : > { %v2153_v3 = vpop.eup %2152 }
 0xe9d   : > { %v1567_v4 = vadd.f32 1.0, %v2153_v3 }
 0xe9f   : > { %v1568_v13 = vmul.f32 0.5, %v1567_v4 }
 0xea1   : > { %v1569_v5 = vmul.f32 %v1568_v13, %v1561_v36 }
 0xeee   : > { %v1572_v12 = vpop.permute.xlu2 %1571 }
 0xeef   : > { %v1574_v6 = vmul.f32 %v1572_v12, %v1569_v5 }
 0xef1   : > { %v1575_v20 = vpack.c.bf16 %v1574_v6, %v1574_v6 }
 0xef3   : > { %1952 = vmatmul.msk.bf16.vlgmr.msrb.gmra.mxu2 %vm1608_vm15, %v1575_v20 }
 0xf76   : > { %v1621_v9 = vpop.f32.mrf.mxu2 }
 0xf77   : > { %v1625_v46 = vadd.f32 %v1621_v9, %v3077_v33 }
 0xf79   : > { %1626 = vst.msk [vmem:[%s618_s8] sm:$0xff] %vm628_vm0, %v1625_v46 }
 0xf7a   : > { %2451 = shalt.err (!%p2448_p7)
}
 0xf7b   : > { %2007 = dma.vmem_to_hbm [thread:$0]  (%p2679_p0), %s1641_s15, 128, %s1643_s18, %s1628_s4  }
 0xf7e   : > { %v1623_v10 = vpop.f32.mrf.mxu2 }
 0xf7f PF: > { %s3201_s19 = sld [smem:[#allocation24_spill]] }
 0xf80   : > { %s3203_s21 = sld [smem:[#allocation25_spill]] }
 0xf85   : > { %s1654_s7 = sand.u32 1, %s3201_s19  }
 0xf86   : > { %p3204_p9 = scmp.ge.s32.totalorder %s3203_s21, 2  ;;  %s1655_s27 = scalar_lea.sflag [#allocation4], %s1654_s7 }
 0xf88   : > { %p2039_p2 = pnand %p3204_p9, %p2685_p4 }
 0xf8a   : > { %p2040_p5 = pneg %p2039_p2 }
 0xf8c   : > { %2489 = dma.done.wait (%p2040_p5), %s1655_s27, 128  }
 0xf8d   : > { %2491 = vsyncadd (%p2040_p5), %s1655_s27, 4294967168  ;;  %s3205_s24 = sld [smem:[#allocation26_spill]]  ;;  %s3207_s21 = smov %s2498_s22 }
 0xf8e   : > { %s3206_s26 = sld [smem:[#allocation27_spill]]  ;;  %s3208_s22 = smov %s2502_s23 }
 0xf93   : > { %p31_p1 = scmp.ge.s32.totalorder %s3205_s24, 4  }
 0xf94   : > { %s3209_s23 = smov %s3206_s26 }
 0xf95   :  { %33 = sbr.rel (!%p31_p1) target bundleno = 18 (0x12), region = 164 }
 0xf9a   :  { %1661 = vsyncpa [#allocation3], 1 }
 0xf9b   :  { %1663 = vsyncpa [#allocation3 + $0x1], 1 }
 0xf9c   :  { %1664 = vsyncpa [#allocation6], 1 }
 0xf9d   :  { %1666 = vsyncpa [#allocation6 + $0x1], 1 }
 0xf9e   :  { %1667 = vsyncpa [#allocation9], 1 }
 0xf9f   :  { %1668 = vsyncpa [#allocation12], 1 }
 0xfa0   :  { %1669 = vsyncpa [#allocation15], 1 }
 0xfa1   :  { %1670 = vsyncpa [#allocation4], 1 }
 0xfa2   :  { %1672 = vsyncpa [#allocation4 + $0x1], 1 }

</bundles_post_ra>
